<compile_context>
chip_gen: v7x
topology: tpu7x:2x2x1
jax: 0.10.0
libtpu: 0.0.40
codegen_flags: <defaults>
</compile_context>

<pallas_src>
import functools

import jax
import jax.numpy as jnp
from jax import lax
from jax.experimental import pallas as pl
from jax.experimental.pallas import tpu as pltpu

GROUPS = 32          # nn.GroupNorm(32, ...)
EPS = 1e-5           # PyTorch GroupNorm default eps


def _silu(v):
    return v * jax.nn.sigmoid(v)


def _band_weights(w_hwio, W):
    """(3, 3, Cin, Cout) conv kernel -> (3, W*Cin, W*Cout) block-banded matrices.

    band[ky][w_src*Cin + c, w_out*Cout + o] == w_hwio[ky, (w_src - w_out) + 1, c, o]
    when |w_src - w_out| <= 1, else 0.  The x-taps (and the SAME x-boundary) are
    thereby folded into one lane-dense MXU matmul per ky.
    """
    w_hwio = w_hwio.astype(jnp.float32)
    cin, cout = w_hwio.shape[2], w_hwio.shape[3]
    mats = []
    for ky in range(3):
        m = jnp.zeros((W * cin, W * cout), jnp.float32)
        for kx in range(3):
            dx = kx - 1
            # sel[w_src, w_out] = 1 iff w_out == w_src - dx
            sel = jnp.eye(W, W, k=-dx, dtype=jnp.float32)
            m = m + jnp.kron(sel, w_hwio[ky, kx])
        mats.append(m)
    return jnp.stack(mats, axis=0)


def _pick_block_b(B, H, W, C, Co, vmem_budget_bytes=20 * 2**20):
    """Largest batch fold that fits the VMEM budget while keeping >= 2 grid steps."""
    best = 1
    for d in range(1, B + 1):
        if B % d:
            continue
        if B >= 2 and B // d < 2:
            continue                      # keep both v7x TensorCores busy + pipelining
        mb = d * H
        if (mb % 8) and d != B:
            continue                      # keep the sublane block dim 8-aligned
        need = mb * W * (C + Co) * 4 * 2 + mb * W * max(C, Co) * 4 * 8
        if need <= vmem_budget_bytes:
            best = d
    return best


def _resblock_kernel(
    x_ref, fs_ref, fsh_ref,
    g1_ref, b1_ref, w1_ref, cb1_ref,
    g2_ref, b2_ref, w2_ref, cb2_ref,
    pg_ref, pgt_ref, sel_ref, selt_ref,
    out_ref,
    pad_ref,
    *, H, eps, inv_count,
):
    mb, wc = x_ref.shape            # mb = block_b * H, wc = W*C (lane-dense)
    wco = out_ref.shape[1]          # = W*Co
    bt = mb // H

    x = x_ref[...].astype(jnp.float32)

    # Zero only the two pad rows of the row-pad scratch.  conv3x3 below only
    # ever writes rows 1..H, so these rows stay zero for both convs.  Re-zeroed
    # every grid step => no cross-step persistence assumption (megacore-safe).
    zrow = jnp.zeros((bt, 1, wc), jnp.float32)
    pad_ref[:, 0:1, :] = zrow
    pad_ref[:, H + 1:H + 2, :] = zrow

    pg = pg_ref[...]                # (W*C, G) 0/1 group pooling
    pgt = pgt_ref[...]              # (G, W*C) group broadcast

    def batch_sum(v):
        # per-batch-element column sums: (mb, L) -> (bt, L)
        if bt == 1:
            return jnp.sum(v, axis=0, keepdims=True)
        return jnp.dot(selt_ref[...], v, preferred_element_type=jnp.float32)

    def batch_bcast(v):
        # (bt, L) -> (mb, L), replicating each batch element over its H rows
        if bt == 1:
            return jnp.broadcast_to(v, (mb, v.shape[1]))
        return jnp.dot(sel_ref[...], v, preferred_element_type=jnp.float32)

    def group_norm(h, gamma, beta):
        # per-(batch, group) mean/var over H*W*gs elements; lanes are (w, c).
        sums = batch_sum(h)
        mean_g = jnp.dot(sums, pg, preferred_element_type=jnp.float32) * inv_count
        mean = batch_bcast(jnp.dot(mean_g, pgt, preferred_element_type=jnp.float32))
        cent = h - mean
        sq = batch_sum(cent * cent)
        var_g = jnp.dot(sq, pg, preferred_element_type=jnp.float32) * inv_count
        var = batch_bcast(jnp.dot(var_g, pgt, preferred_element_type=jnp.float32))
        return cent * lax.rsqrt(var + eps) * gamma + beta

    def conv3x3(h, w_ref_, bias):
        # Banded-matmul 3x3 SAME conv: x-taps live in the (W*Cin, W*Cout) band
        # matrices; y-taps are 3 row-shifted views of the zero-padded row buffer.
        wcin = h.shape[1]
        pad_ref[:, 1:H + 1, :] = h.reshape(bt, H, wcin)
        acc = bias                                        # (1, wcout) broadcasts
        for ky in range(3):                               # dy = ky - 1
            opnd = pad_ref[:, ky:ky + H, :].reshape(mb, wcin)
            acc = acc + jnp.dot(opnd, w_ref_[ky],
                                preferred_element_type=jnp.float32)
        return acc

    # ---- in_layers: GroupNorm -> SiLU -> Conv3x3 ----
    h = group_norm(x, g1_ref[...], b1_ref[...])
    h = h * jax.nn.sigmoid(h)
    h = conv3x3(h, w1_ref, cb1_ref[...])

    # ---- FiLM: h * (1 + z_out) + s_out + emb_out (scale/shift precomputed) ----
    h = (h * batch_bcast(fs_ref[...].reshape(bt, wco))
         + batch_bcast(fsh_ref[...].reshape(bt, wco)))

    # ---- out_layers: GroupNorm -> SiLU -> Dropout -> Conv3x3 ----
    # TODO(synk): Dropout is identity here (inference); training-mode masking
    # would need pltpu.prng_seed / pltpu.prng_random_bits.
    h = group_norm(h, g2_ref[...], b2_ref[...])
    h = h * jax.nn.sigmoid(h)
    h = conv3x3(h, w2_ref, cb2_ref[...])

    # ---- identity skip (out_channels == channels) ----
    out_ref[...] = (x + h).astype(out_ref.dtype)


def causal_resblock(x, emb, s, z, params, *, block_b=None):
    B, H, W, C = x.shape
    Co = params["conv1_w"].shape[-1]
    if Co != C:
        # TODO(synk): non-identity skip (1x1 / 3x3 skip conv) not implemented.
        raise NotImplementedError("identity skip requires out_channels == channels")
    if C % GROUPS != 0:
        raise ValueError("channels must be divisible by 32 (GroupNorm groups)")
    gs = C // GROUPS
    WC, WCo = W * C, W * Co

    # ---- FiLM linears hoisted to XLA (tiny matmuls), lane-tiled to W*Co ----
    emb_out = _silu(emb) @ params["emb_w"] + params["emb_b"]
    s_out = _silu(s) @ params["s_w"] + params["s_b"]
    z_out = _silu(z) @ params["z_w"] + params["z_b"]
    scale_t = jnp.tile(1.0 + z_out, (1, W)).reshape(B, 1, WCo).astype(jnp.float32)
    shift_t = jnp.tile(s_out + emb_out, (1, W)).reshape(B, 1, WCo).astype(jnp.float32)

    # ---- per-channel affine / bias params, lane-tiled to the packed layout ----
    g1_t = jnp.tile(params["gn1_g"].reshape(1, C), (1, W)).astype(jnp.float32)
    b1_t = jnp.tile(params["gn1_b"].reshape(1, C), (1, W)).astype(jnp.float32)
    g2_t = jnp.tile(params["gn2_g"].reshape(1, Co), (1, W)).astype(jnp.float32)
    b2_t = jnp.tile(params["gn2_b"].reshape(1, Co), (1, W)).astype(jnp.float32)
    cb1_t = jnp.tile(params["conv1_b"].reshape(1, Co), (1, W)).astype(jnp.float32)
    cb2_t = jnp.tile(params["conv2_b"].reshape(1, Co), (1, W)).astype(jnp.float32)

    # ---- 3x3 convs as block-banded (W*Cin, W*Cout) matrices, one per ky ----
    band1 = _band_weights(params["conv1_w"], W)     # (3, WC, WCo)
    band2 = _band_weights(params["conv2_w"], W)     # (3, WCo, WCo)

    # ---- group pooling / broadcast matrices (exact 0/1) ----
    ch = jnp.arange(WC) % C
    pg = (ch[:, None] // gs == jnp.arange(GROUPS)[None, :]).astype(jnp.float32)
    pgt = jnp.transpose(pg)

    # ---- lane-dense I/O layout: (B*H, W*C) ----
    x2d = x.reshape(B * H, WC).astype(jnp.float32)

    if block_b is None:
        block_b = _pick_block_b(B, H, W, C, Co)
    assert B % block_b == 0
    Mb = block_b * H
    if (Mb % 8) and Mb != B * H:
        raise ValueError("block_b*H must be a multiple of 8 (sublane tiling)")
    grid = (B // block_b,)

    bidx = jnp.arange(Mb) // H
    sel = (bidx[:, None] == jnp.arange(block_b)[None, :]).astype(jnp.float32)
    selt = jnp.transpose(sel)

    in_specs = [
        pl.BlockSpec((Mb, WC), lambda b: (b, 0)),               # x (lane-dense)
        pl.BlockSpec((block_b, 1, WCo), lambda b: (b, 0, 0)),   # FiLM scale
        pl.BlockSpec((block_b, 1, WCo), lambda b: (b, 0, 0)),   # FiLM shift
        pl.BlockSpec((1, WC), lambda b: (0, 0)),                # gn1 gamma (tiled)
        pl.BlockSpec((1, WC), lambda b: (0, 0)),                # gn1 beta
        pl.BlockSpec((3, WC, WCo), lambda b: (0, 0, 0)),        # conv1 band weights
        pl.BlockSpec((1, WCo), lambda b: (0, 0)),               # conv1 bias (tiled)
        pl.BlockSpec((1, WCo), lambda b: (0, 0)),               # gn2 gamma
        pl.BlockSpec((1, WCo), lambda b: (0, 0)),               # gn2 beta
        pl.BlockSpec((3, WCo, WCo), lambda b: (0, 0, 0)),       # conv2 band weights
        pl.BlockSpec((1, WCo), lambda b: (0, 0)),               # conv2 bias
        pl.BlockSpec((WC, GROUPS), lambda b: (0, 0)),           # group pooling
        pl.BlockSpec((GROUPS, WC), lambda b: (0, 0)),           # group broadcast
        pl.BlockSpec((Mb, block_b), lambda b: (0, 0)),          # row -> batch select
        pl.BlockSpec((block_b, Mb), lambda b: (0, 0)),          # batch -> row select
    ]
    out_specs = pl.BlockSpec((Mb, WCo), lambda b: (b, 0))

    grid_spec = pltpu.PrefetchScalarGridSpec(
        num_scalar_prefetch=0,
        grid=grid,
        in_specs=in_specs,
        out_specs=out_specs,
        scratch_shapes=[pltpu.VMEM((block_b, H + 2, WC), jnp.float32)],
    )

    # VMEM budget: banded weights + double-buffered I/O blocks + live f32 temps.
    band_bytes = 4 * 3 * (WC * WCo + WCo * WCo)
    block_bytes = 4 * Mb * (WC + WCo) * 2
    live_bytes = 4 * Mb * max(WC, WCo) * 10
    vmem_limit = int(min(112 * 2**20,
                         max(32 * 2**20, 2 * (band_bytes + block_bytes + live_bytes))))

    flops = (2 * 3 * (B * H) * WC * WCo          # conv1 (banded)
             + 2 * 3 * (B * H) * WCo * WCo       # conv2 (banded)
             + 8 * B * WC * GROUPS)              # groupnorm pooling matmuls
    transcendentals = B * H * W * (C + Co) + 2 * B * GROUPS
    bytes_accessed = (4 * (B * H) * (WC + WCo)                 # x + out
                      + band_bytes                             # conv weights
                      + 4 * 2 * B * WCo                        # FiLM scale/shift
                      + 4 * (2 * WC + 4 * WCo)                 # affine / bias
                      + 4 * 2 * WC * GROUPS)                   # pooling mats

    kernel = functools.partial(
        _resblock_kernel, H=H, eps=EPS, inv_count=1.0 / (H * W * gs))
    fn = pl.pallas_call(
        kernel,
        out_shape=jax.ShapeDtypeStruct((B * H, WCo), jnp.float32),
        grid_spec=grid_spec,
        compiler_params=pltpu.CompilerParams(
            dimension_semantics=("parallel",),
            vmem_limit_bytes=vmem_limit),
        cost_estimate=pl.CostEstimate(
            flops=int(flops),
            transcendentals=int(transcendentals),
            bytes_accessed=int(bytes_accessed)),
    )
    out = fn(x2d, scale_t, shift_t,
             g1_t, b1_t, band1, cb1_t,
             g2_t, b2_t, band2, cb2_t,
             pg, pgt, sel, selt)
    return out.reshape(B, H, W, Co)


# ---------------------------- pure-JAX reference ----------------------------
def reference(x, emb, s, z, p):
    def gn(h, gamma, beta):
        B, H, W, C = h.shape
        gs = C // GROUPS
        hg = h.reshape(B, H, W, GROUPS, gs)
        mean = hg.mean(axis=(1, 2, 4), keepdims=True)
        var = ((hg - mean) ** 2).mean(axis=(1, 2, 4), keepdims=True)
        hn = ((hg - mean) / jnp.sqrt(var + EPS)).reshape(B, H, W, C)
        return hn * gamma.reshape(1, 1, 1, C) + beta.reshape(1, 1, 1, C)

    def conv3x3(h, w, b):
        out = lax.conv_general_dilated(
            h, w, window_strides=(1, 1), padding="SAME",
            dimension_numbers=("NHWC", "HWIO", "NHWC"),
            precision=lax.Precision.HIGHEST)
        return out + b.reshape(1, 1, 1, -1)

    silu = lambda v: v * jax.nn.sigmoid(v)
    h = conv3x3(silu(gn(x, p["gn1_g"][0], p["gn1_b"][0])), p["conv1_w"], p["conv1_b"][0])
    emb_out = silu(emb) @ p["emb_w"] + p["emb_b"]
    s_out = silu(s) @ p["s_w"] + p["s_b"]
    z_out = silu(z) @ p["z_w"] + p["z_b"]
    h = (h * (1.0 + z_out[:, None, None, :])
         + s_out[:, None, None, :] + emb_out[:, None, None, :])
    h = conv3x3(silu(gn(h, p["gn2_g"][0], p["gn2_b"][0])), p["conv2_w"], p["conv2_b"][0])
    return x + h


if __name__ == "__main__":
    B, H, W = 2, 8, 8
    C = Co = 32          # channels == out_channels -> Identity skip; divisible by 32 groups
    E, S, Z = 32, 16, 16  # emb_channels, s_dim, z_dim

    key = jax.random.PRNGKey(0)
    ks = jax.random.split(key, 20)

    x = jax.random.normal(ks[0], (B, H, W, C), jnp.float32)
    emb = jax.random.normal(ks[1], (B, E), jnp.float32)
    s = jax.random.normal(ks[2], (B, S), jnp.float32)
    z = jax.random.normal(ks[3], (B, Z), jnp.float32)

    params = {
        "gn1_g": 1.0 + 0.1 * jax.random.normal(ks[4], (1, C), jnp.float32),
        "gn1_b": 0.05 * jax.random.normal(ks[5], (1, C), jnp.float32),
        "conv1_w": 0.1 * jax.random.normal(ks[6], (3, 3, C, Co), jnp.float32),
        "conv1_b": 0.05 * jax.random.normal(ks[7], (1, Co), jnp.float32),
        "emb_w": 0.1 * jax.random.normal(ks[8], (E, Co), jnp.float32),
        "emb_b": 0.05 * jax.random.normal(ks[9], (1, Co), jnp.float32),
        "s_w": 0.1 * jax.random.normal(ks[10], (S, Co), jnp.float32),
        "s_b": 0.05 * jax.random.normal(ks[11], (1, Co), jnp.float32),
        "z_w": 0.1 * jax.random.normal(ks[12], (Z, Co), jnp.float32),
        "z_b": 0.05 * jax.random.normal(ks[13], (1, Co), jnp.float32),
        "gn2_g": 1.0 + 0.1 * jax.random.normal(ks[14], (1, Co), jnp.float32),
        "gn2_b": 0.05 * jax.random.normal(ks[15], (1, Co), jnp.float32),
        "conv2_w": 0.1 * jax.random.normal(ks[16], (3, 3, Co, Co), jnp.float32),
        "conv2_b": 0.05 * jax.random.normal(ks[17], (1, Co), jnp.float32),
    }

    out = causal_resblock(x, emb, s, z, params)
    out = jax.block_until_ready(out)

    ref = jax.block_until_ready(reference(x, emb, s, z, params))
    assert out.shape == (B, H, W, Co), out.shape
    # All in-kernel matmuls use f32 operands / f32 accumulation, so compiled
    # Mosaic matches the HIGHEST-precision reference to ~1e-4.  The tolerance
    # below additionally covers backends whose *default* f32 dot precision is a
    # single bf16 pass (e.g. interpret mode falling back to XLA defaults); a
    # structural bug (wrong tap / wrong norm / wrong FiLM) would give O(1) errors.
    err = float(jnp.max(jnp.abs(out - ref)))
    assert jnp.allclose(out, ref, rtol=4e-2, atol=4e-2), err
    print("KERNEL_OK")
</pallas_src>

<mosaic_0001>
module attributes {stable_mosaic.version = 11 : i64} {
  func.func @_resblock_kernel(%arg0: i32, %arg1: memref<8x256xf32, #tpu.memory_space<vmem>>, %arg2: memref<1x1x256xf32, #tpu.memory_space<vmem>>, %arg3: memref<1x1x256xf32, #tpu.memory_space<vmem>>, %arg4: memref<1x256xf32, #tpu.memory_space<vmem>>, %arg5: memref<1x256xf32, #tpu.memory_space<vmem>>, %arg6: memref<3x256x256xf32, #tpu.memory_space<vmem>>, %arg7: memref<1x256xf32, #tpu.memory_space<vmem>>, %arg8: memref<1x256xf32, #tpu.memory_space<vmem>>, %arg9: memref<1x256xf32, #tpu.memory_space<vmem>>, %arg10: memref<3x256x256xf32, #tpu.memory_space<vmem>>, %arg11: memref<1x256xf32, #tpu.memory_space<vmem>>, %arg12: memref<256x32xf32, #tpu.memory_space<vmem>>, %arg13: memref<32x256xf32, #tpu.memory_space<vmem>>, %arg14: memref<8x1xf32, #tpu.memory_space<vmem>>, %arg15: memref<1x8xf32, #tpu.memory_space<vmem>>, %arg16: memref<8x256xf32, #tpu.memory_space<vmem>>, %arg17: memref<1x10x256xf32, #tpu.memory_space<vmem>>) attributes {dimension_semantics = [#tpu.dimension_semantics<parallel>], iteration_bounds = array<i64: 2>, scalar_prefetch = 0 : i64, scratch_operands = 1 : i64, tpu.core_type = #tpu.core_type<tc>, window_params = [{transform_indices = @transform_0, window_bounds = array<i64: 8, 256>}, {transform_indices = @transform_1, window_bounds = array<i64: 1, 1, 256>}, {transform_indices = @transform_2, window_bounds = array<i64: 1, 1, 256>}, {pipeline_mode = #tpu.pipeline_mode<synchronous>, transform_indices = @transform_3, window_bounds = array<i64: 1, 256>}, {pipeline_mode = #tpu.pipeline_mode<synchronous>, transform_indices = @transform_4, window_bounds = array<i64: 1, 256>}, {pipeline_mode = #tpu.pipeline_mode<synchronous>, transform_indices = @transform_5, window_bounds = array<i64: 3, 256, 256>}, {pipeline_mode = #tpu.pipeline_mode<synchronous>, transform_indices = @transform_6, window_bounds = array<i64: 1, 256>}, {pipeline_mode = #tpu.pipeline_mode<synchronous>, transform_indices = @transform_7, window_bounds = array<i64: 1, 256>}, {pipeline_mode = #tpu.pipeline_mode<synchronous>, transform_indices = @transform_8, window_bounds = array<i64: 1, 256>}, {pipeline_mode = #tpu.pipeline_mode<synchronous>, transform_indices = @transform_9, window_bounds = array<i64: 3, 256, 256>}, {pipeline_mode = #tpu.pipeline_mode<synchronous>, transform_indices = @transform_10, window_bounds = array<i64: 1, 256>}, {pipeline_mode = #tpu.pipeline_mode<synchronous>, transform_indices = @transform_11, window_bounds = array<i64: 256, 32>}, {pipeline_mode = #tpu.pipeline_mode<synchronous>, transform_indices = @transform_12, window_bounds = array<i64: 32, 256>}, {pipeline_mode = #tpu.pipeline_mode<synchronous>, transform_indices = @transform_13, window_bounds = array<i64: 8, 1>}, {pipeline_mode = #tpu.pipeline_mode<synchronous>, transform_indices = @transform_14, window_bounds = array<i64: 1, 8>}, {transform_indices = @transform_15, window_bounds = array<i64: 8, 256>}]} {
    %c0 = arith.constant 0 : index
    %c0_0 = arith.constant 0 : index
    %0 = vector.load %arg1[%c0, %c0_0] : memref<8x256xf32, #tpu.memory_space<vmem>>, vector<8x256xf32>
    %cst = arith.constant 0.000000e+00 : f32
    %1 = vector.broadcast %cst : f32 to vector<1x1x256xf32>
    %c0_1 = arith.constant 0 : index
    %c0_2 = arith.constant 0 : index
    %c0_3 = arith.constant 0 : index
    %2 = vector.load %arg17[%c0_1, %c0_2, %c0_3] : memref<1x10x256xf32, #tpu.memory_space<vmem>>, vector<1x1x256xf32>
    tpu.vector_store %arg17[%c0_1, %c0_2, %c0_3], %1 {strides = array<i32>} : memref<1x10x256xf32, #tpu.memory_space<vmem>>, vector<1x1x256xf32>,
    %c0_4 = arith.constant 0 : index
    %c9 = arith.constant 9 : index
    %c0_5 = arith.constant 0 : index
    %3 = vector.load %arg17[%c0_4, %c9, %c0_5] : memref<1x10x256xf32, #tpu.memory_space<vmem>>, vector<1x1x256xf32>
    tpu.vector_store %arg17[%c0_4, %c9, %c0_5], %1 {strides = array<i32>} : memref<1x10x256xf32, #tpu.memory_space<vmem>>, vector<1x1x256xf32>,
    %c0_6 = arith.constant 0 : index
    %c0_7 = arith.constant 0 : index
    %4 = vector.load %arg12[%c0_6, %c0_7] : memref<256x32xf32, #tpu.memory_space<vmem>>, vector<256x32xf32>
    %c0_8 = arith.constant 0 : index
    %c0_9 = arith.constant 0 : index
    %5 = vector.load %arg13[%c0_8, %c0_9] : memref<32x256xf32, #tpu.memory_space<vmem>>, vector<32x256xf32>
    %c0_10 = arith.constant 0 : index
    %c0_11 = arith.constant 0 : index
    %6 = vector.load %arg4[%c0_10, %c0_11] : memref<1x256xf32, #tpu.memory_space<vmem>>, vector<1x256xf32>
    %c0_12 = arith.constant 0 : index
    %c0_13 = arith.constant 0 : index
    %7 = vector.load %arg5[%c0_12, %c0_13] : memref<1x256xf32, #tpu.memory_space<vmem>>, vector<1x256xf32>
    %cst_14 = arith.constant dense<0.000000e+00> : vector<256xf32>
    %8 = vector.multi_reduction <add>, %0, %cst_14 [0] : vector<8x256xf32> to vector<256xf32>
    %9 = vector.shape_cast %8 : vector<256xf32> to vector<1x256xf32>
    %cst_15 = arith.constant dense<0.000000e+00> : vector<1x32xf32>
    %10 = tpu.matmul %9, %4, %cst_15 {dimension_numbers = #tpu.dot_dimension_numbers<[1], [0], [0], [1], [0, 0, 1, 1], [], []>} : vector<1x256xf32>, vector<256x32xf32>, vector<1x32xf32> -> vector<1x32xf32>
    %cst_16 = arith.constant 1.562500e-02 : f32
    %11 = vector.broadcast %cst_16 : f32 to vector<1x32xf32>
    %12 = arith.mulf %10, %11 : vector<1x32xf32>
    %cst_17 = arith.constant dense<0.000000e+00> : vector<1x256xf32>
    %13 = tpu.matmul %12, %5, %cst_17 {dimension_numbers = #tpu.dot_dimension_numbers<[1], [0], [0], [1], [0, 0, 1, 1], [], []>} : vector<1x32xf32>, vector<32x256xf32>, vector<1x256xf32> -> vector<1x256xf32>
    %14 = vector.shape_cast %13 : vector<1x256xf32> to vector<1x256xf32>
    %15 = vector.broadcast %14 : vector<1x256xf32> to vector<8x256xf32>
    %16 = arith.subf %0, %15 : vector<8x256xf32>
    %17 = arith.mulf %16, %16 : vector<8x256xf32>
    %cst_18 = arith.constant dense<0.000000e+00> : vector<256xf32>
    %18 = vector.multi_reduction <add>, %17, %cst_18 [0] : vector<8x256xf32> to vector<256xf32>
    %19 = vector.shape_cast %18 : vector<256xf32> to vector<1x256xf32>
    %cst_19 = arith.constant dense<0.000000e+00> : vector<1x32xf32>
    %20 = tpu.matmul %19, %4, %cst_19 {dimension_numbers = #tpu.dot_dimension_numbers<[1], [0], [0], [1], [0, 0, 1, 1], [], []>} : vector<1x256xf32>, vector<256x32xf32>, vector<1x32xf32> -> vector<1x32xf32>
    %cst_20 = arith.constant 1.562500e-02 : f32
    %21 = vector.broadcast %cst_20 : f32 to vector<1x32xf32>
    %22 = arith.mulf %20, %21 : vector<1x32xf32>
    %cst_21 = arith.constant dense<0.000000e+00> : vector<1x256xf32>
    %23 = tpu.matmul %22, %5, %cst_21 {dimension_numbers = #tpu.dot_dimension_numbers<[1], [0], [0], [1], [0, 0, 1, 1], [], []>} : vector<1x32xf32>, vector<32x256xf32>, vector<1x256xf32> -> vector<1x256xf32>
    %24 = vector.shape_cast %23 : vector<1x256xf32> to vector<1x256xf32>
    %25 = vector.broadcast %24 : vector<1x256xf32> to vector<8x256xf32>
    %cst_22 = arith.constant 9.99999974E-6 : f32
    %26 = vector.broadcast %cst_22 : f32 to vector<8x256xf32>
    %27 = arith.addf %25, %26 : vector<8x256xf32>
    %28 = math.rsqrt %27 : vector<8x256xf32>
    %29 = arith.mulf %16, %28 : vector<8x256xf32>
    %30 = vector.broadcast %6 : vector<1x256xf32> to vector<8x256xf32>
    %31 = arith.mulf %29, %30 : vector<8x256xf32>
    %32 = vector.broadcast %7 : vector<1x256xf32> to vector<8x256xf32>
    %33 = arith.addf %31, %32 : vector<8x256xf32>
    %34 = arith.negf %33 : vector<8x256xf32>
    %35 = math.exp %34 : vector<8x256xf32>
    %cst_23 = arith.constant 1.000000e+00 : f32
    %36 = vector.broadcast %cst_23 : f32 to vector<8x256xf32>
    %37 = arith.addf %36, %35 : vector<8x256xf32>
    %38 = arith.divf %36, %37 : vector<8x256xf32>
    %39 = arith.mulf %33, %38 : vector<8x256xf32>
    %c0_24 = arith.constant 0 : index
    %c0_25 = arith.constant 0 : index
    %40 = vector.load %arg7[%c0_24, %c0_25] : memref<1x256xf32, #tpu.memory_space<vmem>>, vector<1x256xf32>
    %41 = vector.shape_cast %39 : vector<8x256xf32> to vector<1x8x256xf32>
    %c0_26 = arith.constant 0 : index
    %c1 = arith.constant 1 : index
    %c0_27 = arith.constant 0 : index
    %42 = vector.load %arg17[%c0_26, %c1, %c0_27] : memref<1x10x256xf32, #tpu.memory_space<vmem>>, vector<1x8x256xf32>
    tpu.vector_store %arg17[%c0_26, %c1, %c0_27], %41 {strides = array<i32>} : memref<1x10x256xf32, #tpu.memory_space<vmem>>, vector<1x8x256xf32>,
    %c0_28 = arith.constant 0 : index
    %c0_29 = arith.constant 0 : index
    %c0_30 = arith.constant 0 : index
    %43 = vector.load %arg17[%c0_28, %c0_29, %c0_30] : memref<1x10x256xf32, #tpu.memory_space<vmem>>, vector<1x8x256xf32>
    %44 = vector.shape_cast %43 : vector<1x8x256xf32> to vector<8x256xf32>
    %c0_31 = arith.constant 0 : index
    %c0_32 = arith.constant 0 : index
    %c0_33 = arith.constant 0 : index
    %45 = vector.load %arg6[%c0_31, %c0_32, %c0_33] : memref<3x256x256xf32, #tpu.memory_space<vmem>>, vector<1x256x256xf32>
    %46 = vector.shape_cast %45 : vector<1x256x256xf32> to vector<256x256xf32>
    %cst_34 = arith.constant dense<0.000000e+00> : vector<8x256xf32>
    %47 = tpu.matmul %44, %46, %cst_34 {dimension_numbers = #tpu.dot_dimension_numbers<[1], [0], [0], [1], [0, 0, 1, 1], [], []>} : vector<8x256xf32>, vector<256x256xf32>, vector<8x256xf32> -> vector<8x256xf32>
    %48 = vector.broadcast %40 : vector<1x256xf32> to vector<8x256xf32>
    %49 = arith.addf %48, %47 : vector<8x256xf32>
    %c0_35 = arith.constant 0 : index
    %c1_36 = arith.constant 1 : index
    %c0_37 = arith.constant 0 : index
    %50 = vector.load %arg17[%c0_35, %c1_36, %c0_37] : memref<1x10x256xf32, #tpu.memory_space<vmem>>, vector<1x8x256xf32>
    %51 = vector.shape_cast %50 : vector<1x8x256xf32> to vector<8x256xf32>
    %c1_38 = arith.constant 1 : index
    %c0_39 = arith.constant 0 : index
    %c0_40 = arith.constant 0 : index
    %52 = vector.load %arg6[%c1_38, %c0_39, %c0_40] : memref<3x256x256xf32, #tpu.memory_space<vmem>>, vector<1x256x256xf32>
    %53 = vector.shape_cast %52 : vector<1x256x256xf32> to vector<256x256xf32>
    %cst_41 = arith.constant dense<0.000000e+00> : vector<8x256xf32>
    %54 = tpu.matmul %51, %53, %cst_41 {dimension_numbers = #tpu.dot_dimension_numbers<[1], [0], [0], [1], [0, 0, 1, 1], [], []>} : vector<8x256xf32>, vector<256x256xf32>, vector<8x256xf32> -> vector<8x256xf32>
    %55 = arith.addf %49, %54 : vector<8x256xf32>
    %c0_42 = arith.constant 0 : index
    %c2 = arith.constant 2 : index
    %c0_43 = arith.constant 0 : index
    %56 = vector.load %arg17[%c0_42, %c2, %c0_43] : memref<1x10x256xf32, #tpu.memory_space<vmem>>, vector<1x8x256xf32>
    %57 = vector.shape_cast %56 : vector<1x8x256xf32> to vector<8x256xf32>
    %c2_44 = arith.constant 2 : index
    %c0_45 = arith.constant 0 : index
    %c0_46 = arith.constant 0 : index
    %58 = vector.load %arg6[%c2_44, %c0_45, %c0_46] : memref<3x256x256xf32, #tpu.memory_space<vmem>>, vector<1x256x256xf32>
    %59 = vector.shape_cast %58 : vector<1x256x256xf32> to vector<256x256xf32>
    %cst_47 = arith.constant dense<0.000000e+00> : vector<8x256xf32>
    %60 = tpu.matmul %57, %59, %cst_47 {dimension_numbers = #tpu.dot_dimension_numbers<[1], [0], [0], [1], [0, 0, 1, 1], [], []>} : vector<8x256xf32>, vector<256x256xf32>, vector<8x256xf32> -> vector<8x256xf32>
    %61 = arith.addf %55, %60 : vector<8x256xf32>
    %c0_48 = arith.constant 0 : index
    %c0_49 = arith.constant 0 : index
    %c0_50 = arith.constant 0 : index
    %62 = vector.load %arg2[%c0_48, %c0_49, %c0_50] : memref<1x1x256xf32, #tpu.memory_space<vmem>>, vector<1x1x256xf32>
    %63 = vector.shape_cast %62 : vector<1x1x256xf32> to vector<1x256xf32>
    %64 = vector.shape_cast %63 : vector<1x256xf32> to vector<1x256xf32>
    %65 = vector.broadcast %64 : vector<1x256xf32> to vector<8x256xf32>
    %66 = arith.mulf %61, %65 : vector<8x256xf32>
    %c0_51 = arith.constant 0 : index
    %c0_52 = arith.constant 0 : index
    %c0_53 = arith.constant 0 : index
    %67 = vector.load %arg3[%c0_51, %c0_52, %c0_53] : memref<1x1x256xf32, #tpu.memory_space<vmem>>, vector<1x1x256xf32>
    %68 = vector.shape_cast %67 : vector<1x1x256xf32> to vector<1x256xf32>
    %69 = vector.shape_cast %68 : vector<1x256xf32> to vector<1x256xf32>
    %70 = vector.broadcast %69 : vector<1x256xf32> to vector<8x256xf32>
    %71 = arith.addf %66, %70 : vector<8x256xf32>
    %c0_54 = arith.constant 0 : index
    %c0_55 = arith.constant 0 : index
    %72 = vector.load %arg8[%c0_54, %c0_55] : memref<1x256xf32, #tpu.memory_space<vmem>>, vector<1x256xf32>
    %c0_56 = arith.constant 0 : index
    %c0_57 = arith.constant 0 : index
    %73 = vector.load %arg9[%c0_56, %c0_57] : memref<1x256xf32, #tpu.memory_space<vmem>>, vector<1x256xf32>
    %cst_58 = arith.constant dense<0.000000e+00> : vector<256xf32>
    %74 = vector.multi_reduction <add>, %71, %cst_58 [0] : vector<8x256xf32> to vector<256xf32>
    %75 = vector.shape_cast %74 : vector<256xf32> to vector<1x256xf32>
    %cst_59 = arith.constant dense<0.000000e+00> : vector<1x32xf32>
    %76 = tpu.matmul %75, %4, %cst_59 {dimension_numbers = #tpu.dot_dimension_numbers<[1], [0], [0], [1], [0, 0, 1, 1], [], []>} : vector<1x256xf32>, vector<256x32xf32>, vector<1x32xf32> -> vector<1x32xf32>
    %cst_60 = arith.constant 1.562500e-02 : f32
    %77 = vector.broadcast %cst_60 : f32 to vector<1x32xf32>
    %78 = arith.mulf %76, %77 : vector<1x32xf32>
    %cst_61 = arith.constant dense<0.000000e+00> : vector<1x256xf32>
    %79 = tpu.matmul %78, %5, %cst_61 {dimension_numbers = #tpu.dot_dimension_numbers<[1], [0], [0], [1], [0, 0, 1, 1], [], []>} : vector<1x32xf32>, vector<32x256xf32>, vector<1x256xf32> -> vector<1x256xf32>
    %80 = vector.shape_cast %79 : vector<1x256xf32> to vector<1x256xf32>
    %81 = vector.broadcast %80 : vector<1x256xf32> to vector<8x256xf32>
    %82 = arith.subf %71, %81 : vector<8x256xf32>
    %83 = arith.mulf %82, %82 : vector<8x256xf32>
    %cst_62 = arith.constant dense<0.000000e+00> : vector<256xf32>
    %84 = vector.multi_reduction <add>, %83, %cst_62 [0] : vector<8x256xf32> to vector<256xf32>
    %85 = vector.shape_cast %84 : vector<256xf32> to vector<1x256xf32>
    %cst_63 = arith.constant dense<0.000000e+00> : vector<1x32xf32>
    %86 = tpu.matmul %85, %4, %cst_63 {dimension_numbers = #tpu.dot_dimension_numbers<[1], [0], [0], [1], [0, 0, 1, 1], [], []>} : vector<1x256xf32>, vector<256x32xf32>, vector<1x32xf32> -> vector<1x32xf32>
    %cst_64 = arith.constant 1.562500e-02 : f32
    %87 = vector.broadcast %cst_64 : f32 to vector<1x32xf32>
    %88 = arith.mulf %86, %87 : vector<1x32xf32>
    %cst_65 = arith.constant dense<0.000000e+00> : vector<1x256xf32>
    %89 = tpu.matmul %88, %5, %cst_65 {dimension_numbers = #tpu.dot_dimension_numbers<[1], [0], [0], [1], [0, 0, 1, 1], [], []>} : vector<1x32xf32>, vector<32x256xf32>, vector<1x256xf32> -> vector<1x256xf32>
    %90 = vector.shape_cast %89 : vector<1x256xf32> to vector<1x256xf32>
    %91 = vector.broadcast %90 : vector<1x256xf32> to vector<8x256xf32>
    %cst_66 = arith.constant 9.99999974E-6 : f32
    %92 = vector.broadcast %cst_66 : f32 to vector<8x256xf32>
    %93 = arith.addf %91, %92 : vector<8x256xf32>
    %94 = math.rsqrt %93 : vector<8x256xf32>
    %95 = arith.mulf %82, %94 : vector<8x256xf32>
    %96 = vector.broadcast %72 : vector<1x256xf32> to vector<8x256xf32>
    %97 = arith.mulf %95, %96 : vector<8x256xf32>
    %98 = vector.broadcast %73 : vector<1x256xf32> to vector<8x256xf32>
    %99 = arith.addf %97, %98 : vector<8x256xf32>
    %100 = arith.negf %99 : vector<8x256xf32>
    %101 = math.exp %100 : vector<8x256xf32>
    %cst_67 = arith.constant 1.000000e+00 : f32
    %102 = vector.broadcast %cst_67 : f32 to vector<8x256xf32>
    %103 = arith.addf %102, %101 : vector<8x256xf32>
    %104 = arith.divf %102, %103 : vector<8x256xf32>
    %105 = arith.mulf %99, %104 : vector<8x256xf32>
    %c0_68 = arith.constant 0 : index
    %c0_69 = arith.constant 0 : index
    %106 = vector.load %arg11[%c0_68, %c0_69] : memref<1x256xf32, #tpu.memory_space<vmem>>, vector<1x256xf32>
    %107 = vector.shape_cast %105 : vector<8x256xf32> to vector<1x8x256xf32>
    %c0_70 = arith.constant 0 : index
    %c1_71 = arith.constant 1 : index
    %c0_72 = arith.constant 0 : index
    %108 = vector.load %arg17[%c0_70, %c1_71, %c0_72] : memref<1x10x256xf32, #tpu.memory_space<vmem>>, vector<1x8x256xf32>
    tpu.vector_store %arg17[%c0_70, %c1_71, %c0_72], %107 {strides = array<i32>} : memref<1x10x256xf32, #tpu.memory_space<vmem>>, vector<1x8x256xf32>,
    %c0_73 = arith.constant 0 : index
    %c0_74 = arith.constant 0 : index
    %c0_75 = arith.constant 0 : index
    %109 = vector.load %arg17[%c0_73, %c0_74, %c0_75] : memref<1x10x256xf32, #tpu.memory_space<vmem>>, vector<1x8x256xf32>
    %110 = vector.shape_cast %109 : vector<1x8x256xf32> to vector<8x256xf32>
    %c0_76 = arith.constant 0 : index
    %c0_77 = arith.constant 0 : index
    %c0_78 = arith.constant 0 : index
    %111 = vector.load %arg10[%c0_76, %c0_77, %c0_78] : memref<3x256x256xf32, #tpu.memory_space<vmem>>, vector<1x256x256xf32>
    %112 = vector.shape_cast %111 : vector<1x256x256xf32> to vector<256x256xf32>
    %cst_79 = arith.constant dense<0.000000e+00> : vector<8x256xf32>
    %113 = tpu.matmul %110, %112, %cst_79 {dimension_numbers = #tpu.dot_dimension_numbers<[1], [0], [0], [1], [0, 0, 1, 1], [], []>} : vector<8x256xf32>, vector<256x256xf32>, vector<8x256xf32> -> vector<8x256xf32>
    %114 = vector.broadcast %106 : vector<1x256xf32> to vector<8x256xf32>
    %115 = arith.addf %114, %113 : vector<8x256xf32>
    %c0_80 = arith.constant 0 : index
    %c1_81 = arith.constant 1 : index
    %c0_82 = arith.constant 0 : index
    %116 = vector.load %arg17[%c0_80, %c1_81, %c0_82] : memref<1x10x256xf32, #tpu.memory_space<vmem>>, vector<1x8x256xf32>
    %117 = vector.shape_cast %116 : vector<1x8x256xf32> to vector<8x256xf32>
    %c1_83 = arith.constant 1 : index
    %c0_84 = arith.constant 0 : index
    %c0_85 = arith.constant 0 : index
    %118 = vector.load %arg10[%c1_83, %c0_84, %c0_85] : memref<3x256x256xf32, #tpu.memory_space<vmem>>, vector<1x256x256xf32>
    %119 = vector.shape_cast %118 : vector<1x256x256xf32> to vector<256x256xf32>
    %cst_86 = arith.constant dense<0.000000e+00> : vector<8x256xf32>
    %120 = tpu.matmul %117, %119, %cst_86 {dimension_numbers = #tpu.dot_dimension_numbers<[1], [0], [0], [1], [0, 0, 1, 1], [], []>} : vector<8x256xf32>, vector<256x256xf32>, vector<8x256xf32> -> vector<8x256xf32>
    %121 = arith.addf %115, %120 : vector<8x256xf32>
    %c0_87 = arith.constant 0 : index
    %c2_88 = arith.constant 2 : index
    %c0_89 = arith.constant 0 : index
    %122 = vector.load %arg17[%c0_87, %c2_88, %c0_89] : memref<1x10x256xf32, #tpu.memory_space<vmem>>, vector<1x8x256xf32>
    %123 = vector.shape_cast %122 : vector<1x8x256xf32> to vector<8x256xf32>
    %c2_90 = arith.constant 2 : index
    %c0_91 = arith.constant 0 : index
    %c0_92 = arith.constant 0 : index
    %124 = vector.load %arg10[%c2_90, %c0_91, %c0_92] : memref<3x256x256xf32, #tpu.memory_space<vmem>>, vector<1x256x256xf32>
    %125 = vector.shape_cast %124 : vector<1x256x256xf32> to vector<256x256xf32>
    %cst_93 = arith.constant dense<0.000000e+00> : vector<8x256xf32>
    %126 = tpu.matmul %123, %125, %cst_93 {dimension_numbers = #tpu.dot_dimension_numbers<[1], [0], [0], [1], [0, 0, 1, 1], [], []>} : vector<8x256xf32>, vector<256x256xf32>, vector<8x256xf32> -> vector<8x256xf32>
    %127 = arith.addf %121, %126 : vector<8x256xf32>
    %128 = arith.addf %0, %127 : vector<8x256xf32>
    %c0_94 = arith.constant 0 : index
    %c0_95 = arith.constant 0 : index
    %129 = vector.load %arg16[%c0_94, %c0_95] : memref<8x256xf32, #tpu.memory_space<vmem>>, vector<8x256xf32>
    tpu.vector_store %arg16[%c0_94, %c0_95], %128 {strides = array<i32>} : memref<8x256xf32, #tpu.memory_space<vmem>>, vector<8x256xf32>,
    return
  }
  func.func @transform_0(%arg0: i32) -> (i32, i32) {
    %c0_i32 = arith.constant 0 : i32
    %c0_i32_0 = arith.constant 0 : i32
    return %arg0, %c0_i32 : i32, i32
  }
  func.func @transform_1(%arg0: i32) -> (i32, i32, i32) {
    %c0_i32 = arith.constant 0 : i32
    %c0_i32_0 = arith.constant 0 : i32
    %c0_i32_1 = arith.constant 0 : i32
    return %arg0, %c0_i32, %c0_i32_0 : i32, i32, i32
  }
  func.func @transform_2(%arg0: i32) -> (i32, i32, i32) {
    %c0_i32 = arith.constant 0 : i32
    %c0_i32_0 = arith.constant 0 : i32
    %c0_i32_1 = arith.constant 0 : i32
    return %arg0, %c0_i32, %c0_i32_0 : i32, i32, i32
  }
  func.func @transform_3(%arg0: i32) -> (i32, i32) {
    %c0_i32 = arith.constant 0 : i32
    %c0_i32_0 = arith.constant 0 : i32
    %c0_i32_1 = arith.constant 0 : i32
    return %c0_i32, %c0_i32_0 : i32, i32
  }
  func.func @transform_4(%arg0: i32) -> (i32, i32) {
    %c0_i32 = arith.constant 0 : i32
    %c0_i32_0 = arith.constant 0 : i32
    %c0_i32_1 = arith.constant 0 : i32
    return %c0_i32, %c0_i32_0 : i32, i32
  }
  func.func @transform_5(%arg0: i32) -> (i32, i32, i32) {
    %c0_i32 = arith.constant 0 : i32
    %c0_i32_0 = arith.constant 0 : i32
    %c0_i32_1 = arith.constant 0 : i32
    %c0_i32_2 = arith.constant 0 : i32
    return %c0_i32, %c0_i32_0, %c0_i32_1 : i32, i32, i32
  }
  func.func @transform_6(%arg0: i32) -> (i32, i32) {
    %c0_i32 = arith.constant 0 : i32
    %c0_i32_0 = arith.constant 0 : i32
    %c0_i32_1 = arith.constant 0 : i32
    return %c0_i32, %c0_i32_0 : i32, i32
  }
  func.func @transform_7(%arg0: i32) -> (i32, i32) {
    %c0_i32 = arith.constant 0 : i32
    %c0_i32_0 = arith.constant 0 : i32
    %c0_i32_1 = arith.constant 0 : i32
    return %c0_i32, %c0_i32_0 : i32, i32
  }
  func.func @transform_8(%arg0: i32) -> (i32, i32) {
    %c0_i32 = arith.constant 0 : i32
    %c0_i32_0 = arith.constant 0 : i32
    %c0_i32_1 = arith.constant 0 : i32
    return %c0_i32, %c0_i32_0 : i32, i32
  }
  func.func @transform_9(%arg0: i32) -> (i32, i32, i32) {
    %c0_i32 = arith.constant 0 : i32
    %c0_i32_0 = arith.constant 0 : i32
    %c0_i32_1 = arith.constant 0 : i32
    %c0_i32_2 = arith.constant 0 : i32
    return %c0_i32, %c0_i32_0, %c0_i32_1 : i32, i32, i32
  }
  func.func @transform_10(%arg0: i32) -> (i32, i32) {
    %c0_i32 = arith.constant 0 : i32
    %c0_i32_0 = arith.constant 0 : i32
    %c0_i32_1 = arith.constant 0 : i32
    return %c0_i32, %c0_i32_0 : i32, i32
  }
  func.func @transform_11(%arg0: i32) -> (i32, i32) {
    %c0_i32 = arith.constant 0 : i32
    %c0_i32_0 = arith.constant 0 : i32
    %c0_i32_1 = arith.constant 0 : i32
    return %c0_i32, %c0_i32_0 : i32, i32
  }
  func.func @transform_12(%arg0: i32) -> (i32, i32) {
    %c0_i32 = arith.constant 0 : i32
    %c0_i32_0 = arith.constant 0 : i32
    %c0_i32_1 = arith.constant 0 : i32
    return %c0_i32, %c0_i32_0 : i32, i32
  }
  func.func @transform_13(%arg0: i32) -> (i32, i32) {
    %c0_i32 = arith.constant 0 : i32
    %c0_i32_0 = arith.constant 0 : i32
    %c0_i32_1 = arith.constant 0 : i32
    return %c0_i32, %c0_i32_0 : i32, i32
  }
  func.func @transform_14(%arg0: i32) -> (i32, i32) {
    %c0_i32 = arith.constant 0 : i32
    %c0_i32_0 = arith.constant 0 : i32
    %c0_i32_1 = arith.constant 0 : i32
    return %c0_i32, %c0_i32_0 : i32, i32
  }
  func.func @transform_15(%arg0: i32) -> (i32, i32) {
    %c0_i32 = arith.constant 0 : i32
    %c0_i32_0 = arith.constant 0 : i32
    return %arg0, %c0_i32 : i32, i32
  }
}

</mosaic_0001>

<bundles_post_ra>
// kernel: tpu_custom_call.1
= control target key start
LH: loop header
LB: loop body
LE: loop exit
PB: predicated region body
PF: predicated region fallthrough
CT: control target
= control target key end

     0   :  { %s4018_s0 = inlined_call_operand.vmem [shape: f32[16,256], index: 0, kind: input, shape index: {}]   ;;  %s4019_s1 = inlined_call_operand.vmem [shape: f32[2,1,256], index: 1, kind: input, shape index: {}]   ;;  %s4020_s2 = inlined_call_operand.vmem [shape: f32[2,1,256], index: 2, kind: input, shape index: {}]   ;;  %s4021_s3 = inlined_call_operand.vmem [shape: f32[1,256], index: 3, kind: input, shape index: {}]   ;;  %s4022_s4 = inlined_call_operand.vmem [shape: f32[1,256], index: 4, kind: input, shape index: {}]   ;;  %s4023_s5 = inlined_call_operand.hbm [shape: f32[3,256,256], index: 5, kind: input, shape index: {}]   ;;  %s4024_s6 = inlined_call_operand.vmem [shape: f32[1,256], index: 6, kind: input, shape index: {}]   ;;  %s4025_s7 = inlined_call_operand.vmem [shape: f32[1,256], index: 7, kind: input, shape index: {}]   ;;  %s4026_s8 = inlined_call_operand.vmem [shape: f32[1,256], index: 8, kind: input, shape index: {}]   ;;  %s4027_s9 = inlined_call_operand.hbm [shape: f32[3,256,256], index: 9, kind: input, shape index: {}]   ;;  %s4028_s10 = inlined_call_operand.vmem [shape: f32[1,256], index: 10, kind: input, shape index: {}]   ;;  %s4029_s11 = inlined_call_operand.vmem [shape: f32[256,32], index: 11, kind: input, shape index: {}]   ;;  %s4030_s12 = inlined_call_operand.vmem [shape: f32[32,256], index: 12, kind: input, shape index: {}]   ;;  %s4031_s13 = inlined_call_operand.vmem [shape: f32[8,1], index: 13, kind: input, shape index: {}]   ;;  %s4032_s14 = inlined_call_operand.vmem [shape: f32[1,8], index: 14, kind: input, shape index: {}]   ;;  %s4033_s15 = inlined_call_operand.hbm [shape: f32[16,256], index: 15, kind: output, shape index: {}]  }
   0x1   :  { %4044 = sst [smem:[#allocation18_spill]] %s4033_s15 }
   0x2   :  { %20 = vsyncpa [#allocation4], 0 }
   0x3   :  { %21 = vsyncpa [#allocation7], 0 }
   0x4   :  { %22 = vsyncpa [#allocation5], 0 }
   0x5   :  { %24 = vsyncpa [#allocation5 + $0x1], 0  ;;  %s3492_s18 = smov 0   ;;  %s3494_s19 = smov 0  }
   0x6   :  { %s3496_s20 = smov 0   ;;  %s3498_s21 = smov 0  }
   0x7 LB: > { %4045 = sst [smem:[#allocation12_spill]] %s3392_s18  ;;  %s3513_s13 = sadd.s32 4294967295, %s3404_s21   ;;  %s3404_s21 = sphi %s3498_s21, %s4066_s21   ;;  %s3400_s20 = sphi %s3496_s20, %s4068_s20   ;;  %s3396_s19 = sphi %s3494_s19, %s4070_s19   ;;  %s3392_s18 = sphi %s3492_s18, %s4069_s18  }
   0x8   : > { %4046 = sst [smem:[#allocation13_spill]] %s3400_s20  ;;  %s2465_s14 = sadd.s32 4294967294, %s3404_s21  }
   0x9   : > { %4047 = sst [smem:[#allocation14_spill]] %s3404_s21  ;;  %s3517_s22 = sadd.s32 1, %s3404_s21  }
   0xa   : > { %4048 = sst [smem:[#allocation15_spill]] %s3517_s22  ;;  %s367_s23 = sadd.s32 1, %s3400_s20 }
   0xb   : > { %s364_s24 = ssub.s32 %s3404_s21, %s3517_s22  ;;  %p377_p0 = scmp.ne.s32.totalorder %s3400_s20, %s3396_s19 }
   0xc   : > { %p365_p1 = scmp.eq.s32.totalorder %s364_s24, 0  ;;  %p378_p2 = scmp.eq.s32.totalorder %s3513_s13, 1 }
   0xd   : > { %p383_p3 = scmp.ne.s32.totalorder %s3396_s19, %s3392_s18  ;;  %p384_p4 = scmp.eq.s32.totalorder %s2465_s14, 1 }
   0xe   : > { %s3528_s25 = scalar_select %p365_p1, %s3400_s20, %s367_s23  }
   0xf   : > { %p3530_p5 = por %p378_p2, %p377_p0  ;;  %p3534_p6 = por %p384_p4, %p383_p3 }
  0x10   : > { %4049 = sst [smem:[#allocation16_spill]] %s3528_s25  ;;  %p2466_p7 = scmp.ge.s32.totalorder %s3404_s21, 1 }
  0x11   : > { %s4050_s26 = scalar_select %p3530_p5, 1, 0 }
  0x12   : > { %s4051_s27 = scalar_select %p3534_p6, 1, 0 }
  0x13   : > { %p391_p8 = scmp.lt.s32.totalorder %s3404_s21, 3  ;;  %p4038_p9 = scmp.eq.s32.totalorder %s3513_s13, 0 }
  0x14   : > { %4052 = sst [smem:[#allocation17_spill]] %s4051_s27  ;;  %s3406_s29 = smov [#allocation3]  }
  0x15   : > { %p3541_p10 = pnand %p2466_p7, %p391_p8  ;;  %s409_s30 = sshll.u32 %s3406_s29, 4  ;;  %s410_s30 = int_to_ptr.vmem [resolvable:$true] %s409_s30 }
  0x16   : > { %s3407_s17 = smov [#allocation6]   ;;  %s3278_s25 = scalar_lea.hbm %s4023_s5, 24576 }
  0x17   : > { %s4053_s28 = scalar_select %p3541_p10, 1, 0 }
  0x18   : > { %p3199_p11 = pneg %p3541_p10  ;;  %s431_s14 = sshll.u32 %s3407_s17, 4  ;;  %s3553_s14 = int_to_ptr.vmem [resolvable:$true] %s431_s14 }
  0x19   : > { %p3279_p13 = scmp.ne.s32.totalorder %s4023_s5, %s3278_s25  ;;  %p3285_p3 = scmp.lt.u32.totalorder %s3278_s25, %s4023_s5 }
  0x1a   : > { %p3549_p12 = pnand %p4038_p9, %p3199_p11 }
  0x1c   : > { %p3280_p0 = pneg %p3549_p12 }
  0x1e   : > { %p3281_p1 = pnand %p3280_p0, %p3279_p13 }
  0x20   : > { %p3282_p2 = pneg %p3281_p1 }
  0x22   : > { %p3287_p4 = pnand %p3285_p3, %p3282_p2 }
  0x24   : > { %3290 = shalt.err (!%p3287_p4)
}
  0x25   : > { %s3291_s17 = scalar_lea.vmem %s410_s30, 24576  ;;  %p3299_p9 = scmp.lt.s32.totalorder %s410_s30, %s410_s30 }
  0x26   : > { %p3292_p7 = scmp.ne.s32.totalorder %s410_s30, %s3291_s17  ;;  %p3300_p6 = scmp.lt.s32.totalorder %s3291_s17, %s3291_s17 }
  0x28   : > { %p3294_p8 = pnand %p3292_p7, %p3280_p0  ;;  %p3301_p5 = por %p3300_p6, %p3299_p9 }
  0x2a   : > { %p3295_p11 = pneg %p3294_p8 }
  0x2c   : > { %p3302_p10 = pnand %p3301_p5, %p3295_p11 }
  0x2e   : > { %3305 = shalt.err (!%p3302_p10)
}
  0x2f   : > { %s3408_s20 = smov 256   ;;  %s3409_s23 = smov 16  }
  0x30   : > { %3202 = dma.hbm_to_vmem [thread:$0]  (!%p3549_p12), %s4023_s5, 24576, %s410_s30, [#allocation4], %s3408_s20, %s3408_s20, %s3409_s23  }
  0x31   : > { %s3306_s29 = scalar_lea.hbm %s4027_s9, 24576 }
  0x32   : > { %p3307_p13 = scmp.ne.s32.totalorder %s4027_s9, %s3306_s29  ;;  %p3313_p9 = scmp.lt.u32.totalorder %s3306_s29, %s4027_s9 }
  0x34   : > { %p3309_p5 = pnand %p3307_p13, %p3280_p0 }
  0x36   : > { %p3310_p6 = pneg %p3309_p5 }
  0x38   : > { %p3315_p10 = pnand %p3313_p9, %p3310_p6 }
  0x3a   : > { %3318 = shalt.err (!%p3315_p10)
}
  0x3b   : > { %s3319_s30 = scalar_lea.vmem %s3553_s14, 24576  ;;  %p3327_p4 = scmp.lt.s32.totalorder %s3553_s14, %s3553_s14 }
  0x3c   : > { %p3320_p1 = scmp.ne.s32.totalorder %s3553_s14, %s3319_s30  ;;  %p3328_p7 = scmp.lt.s32.totalorder %s3319_s30, %s3319_s30 }
  0x3e   : > { %p3322_p2 = pnand %p3320_p1, %p3280_p0  ;;  %p3329_p8 = por %p3328_p7, %p3327_p4 }
  0x40   : > { %p3323_p3 = pneg %p3322_p2 }
  0x42   : > { %p3330_p11 = pnand %p3329_p8, %p3323_p3 }
  0x44   : > { %3333 = shalt.err (!%p3330_p11)
}
  0x45   : > { %3205 = dma.hbm_to_vmem [thread:$0]  (!%p3549_p12), %s4027_s9, 24576, %s3553_s14, [#allocation7], %s3408_s20, %s3408_s20, %s3409_s23  }
  0x46   : > { %p4055_p13 = scmp.ne.s32.totalorder %s4053_s28, 0 }
  0x47   : > { %p4056_p5 = scmp.eq.s32.totalorder (!%p4055_p13), %s3513_s13, 0 }
  0x48   : > { %484 = sbr.rel (%p4055_p13) target bundleno = 2716 (0xa9c), region = 80 }
  0x4f   : > { %3379 = dma.done.wait (%p4056_p5), [#allocation4], 24576   ;;  %p4057_p0 = pmov %p4056_p5 }
  0x51   : > { %3381 = vsyncadd (%p4057_p0), [#allocation4], 4294942720  ;;  %p4058_p6 = pmov %p4057_p0 }
  0x52   : > { %p4059_p9 = pmov %p4057_p0 }
  0x53   : > { %3383 = dma.done.wait (%p4058_p6), [#allocation7], 24576  }
  0x54   : > { %3385 = vsyncadd (%p4059_p9), [#allocation7], 4294942720  ;;  %p544_p10 = scmp.lt.s32.totalorder %s3513_s13, 1  ;;  %v584_v0 = vld [vmem:[%s4029_s11 + $0x80] sm:$0xff]  ;;  %v585_v1 = vld [vmem:[%s4029_s11 + $0x88] sm:$0xff]  ;;  %vm693_vm1 = vcmask 261120  }
  0x55   : > { %v568_v2 = vld [vmem:[%s4029_s11] sm:$0xff]  ;;  %v3625_v3 = vpack.c.bf16 %v585_v1, %v584_v0  ;;  %v569_v4 = vld [vmem:[%s4029_s11 + $0x8] sm:$0xff]  ;;  %v586_v5 = vld [vmem:[%s4029_s11 + $0x90] sm:$0xff]  ;;  %vm1225_vm2 = vcmask 1046528   ;;  %vm1380_vm3 = vcmask 1045504   ;;  %s541_s24 = sand.u32 1, %s3396_s19  }
  0x56   : > { %s3623_s22 = scalar_select %p544_p10, %s3513_s13, 1  ;;  %v587_v6 = vld [vmem:[%s4029_s11 + $0x98] sm:$0xff]  ;;  %v3636_v7 = vpack.c.bf16 %v569_v4, %v568_v2  ;;  %v570_v9 = vld [vmem:[%s4029_s11 + $0x10] sm:$0xff]  ;;  %v588_v11 = vld [vmem:[%s4029_s11 + $0xa0] sm:$0xff] }
  0x57   : > { %v3638_v8 = vpack.c.bf16 %v587_v6, %v586_v5  ;;  %v571_v10 = vld [vmem:[%s4029_s11 + $0x18] sm:$0xff]  ;;  %2634 = vmatprep.subr.bf16.mxu0 %v3625_v3  ;;  %v589_v12 = vld [vmem:[%s4029_s11 + $0xa8] sm:$0xff]  ;;  %2906 = vmatprep.subr.bf16.mxu1 %v3625_v3  ;;  %v572_v15 = vld [vmem:[%s4029_s11 + $0x20] sm:$0xff]  ;;  %s2473_s17 = sshll.u32 %s541_s24, 4  ;;  %p4061_p1 = scmp.ne.s32.totalorder %s4050_s26, 0 }
  0x58   : > { %2636 = vmatpush3.bf16.msra.mxu0 %v3636_v7  ;;  %v3655_v13 = vpack.c.bf16 %v571_v10, %v570_v9  ;;  %s2491_s25 = sshll.u32 %s3623_s22, 4  ;;  %2908 = vmatpush3.bf16.msra.mxu1 %v3636_v7  ;;  %v3660_v14 = vpack.c.bf16 %v589_v12, %v588_v11  ;;  %v573_v16 = vld [vmem:[%s4029_s11 + $0x28] sm:$0xff]  ;;  %v590_v17 = vld [vmem:[%s4029_s11 + $0xb0] sm:$0xff]  ;;  %v591_v18 = vld [vmem:[%s4029_s11 + $0xb8] sm:$0xff]  ;;  %s543_s15 = scalar_lea.vmem [#allocation8], %s2473_s17 }
  0x59   : > { %2638 = vmatprep.subr.bf16.mxu0 %v3638_v8  ;;  %2910 = vmatprep.subr.bf16.mxu1 %v3638_v8  ;;  %s3678_s14 = scalar_lea.vmem %s4018_s0, %s2491_s25  ;;  %v3681_v19 = vpack.c.bf16 %v573_v16, %v572_v15  ;;  %v3685_v20 = vpack.c.bf16 %v591_v18, %v590_v17  ;;  %v574_v21 = vld [vmem:[%s4029_s11 + $0x30] sm:$0xff]  ;;  %v575_v22 = vld [vmem:[%s4029_s11 + $0x38] sm:$0xff]  ;;  %v592_v23 = vld [vmem:[%s4029_s11 + $0xc0] sm:$0xff]  ;;  %v559_v15 = vlaneseq  ;;  %v3410_v16 = vmov 0.0   ;;  %s2476_s25 = sshll.u32 %s3623_s22, 1 }
  0x5a   : > { %v593_v24 = vld [vmem:[%s4029_s11 + $0xc8] sm:$0xff]  ;;  %v3701_v25 = vld [vmem:[%s3678_s14] sm:$0xff]  ;;  %v3708_v28 = vpack.c.bf16 %v575_v22, %v574_v21  ;;  %v594_v33 = vld [vmem:[%s4029_s11 + $0xd0] sm:$0xff]  ;;  %s552_s30 = scalar_lea.vmem %s4019_s1, %s2476_s25  ;;  %s556_s28 = scalar_lea.vmem %s4020_s2, %s2476_s25 }
  0x5b   : > { %v3704_v26 = vld [vmem:[%s3678_s14 + $0x8] sm:$0xff]  ;;  %v610_v27 = vrot.slane %v3701_v25, 4  ;;  %v3713_v30 = vpack.c.bf16 %v593_v24, %v592_v23  ;;  %v576_v31 = vld [vmem:[%s4029_s11 + $0x40] sm:$0xff]  ;;  %v595_v34 = vld [vmem:[%s4029_s11 + $0xd8] sm:$0xff]  ;;  %vm561_vm0 = vcmp.lt.s32.totalorder %v559_v15, 256  ;;  %v3850_v23 = vshrl.u32 %v559_v15, 7 }
  0x5c   : > { %2640 = vmatpush3.bf16.msra.mxu0 %v3655_v13  ;;  %2912 = vmatpush3.bf16.msra.mxu1 %v3655_v13  ;;  %v616_v29 = vrot.slane %v3704_v26, 4  ;;  %v577_v32 = vld [vmem:[%s4029_s11 + $0x48] sm:$0xff]  ;;  %v3735_v39 = vpack.c.bf16 %v595_v34, %v594_v33  ;;  %v578_v40 = vld [vmem:[%s4029_s11 + $0x50] sm:$0xff]  ;;  %v579_v41 = vld [vmem:[%s4029_s11 + $0x58] sm:$0xff]  ;;  %s2360_s18 = sshll.u32 %s543_s15, 4  ;;  %s3978_s18 = int_to_ptr.vmem [resolvable:$true] %s2360_s18 }
  0x5d   : > { %2642 = vmatprep.subr.bf16.mxu0 %v3660_v14  ;;  %2914 = vmatprep.subr.bf16.mxu1 %v3660_v14  ;;  %v611_v36 = vadd.f32 %v610_v27, %v3701_v25  ;;  %v3731_v37 = vpack.c.bf16 %v577_v32, %v576_v31  ;;  %v596_v42 = vld [vmem:[%s4029_s11 + $0xe0] sm:$0xff]  ;;  %v597_v43 = vld [vmem:[%s4029_s11 + $0xe8] sm:$0xff]  ;;  %v3751_v46 = vpack.c.bf16 %v579_v41, %v578_v40  ;;  %v598_v51 = vld [vmem:[%s4029_s11 + $0xf0] sm:$0xff]  ;;  %v3853_v24 = vsub.s32 0, %v3850_v23  ;;  %s3334_s20 = scalar_lea.vmem %s3978_s18, 256 }
  0x5e   : > { %v617_v35 = vadd.f32 %v616_v29, %v3704_v26  ;;  %v3755_v48 = vpack.c.bf16 %v597_v43, %v596_v42  ;;  %v580_v49 = vld [vmem:[%s4029_s11 + $0x60] sm:$0xff]  ;;  %v581_v50 = vld [vmem:[%s4029_s11 + $0x68] sm:$0xff]  ;;  %v599_v52 = vld [vmem:[%s4029_s11 + $0xf8] sm:$0xff]  ;;  %563 = vst.msk [vmem:[#allocation2] ss:$8 sm:$0x3] %vm561_vm0, %v3410_v16  ;;  %p3335_p12 = scmp.ne.s32.totalorder %s3978_s18, %s3334_s20 }
  0x5f   : > { %v612_v45 = vrot.slane %v611_v36, 2  ;;  %v3771_v55 = vpack.c.bf16 %v581_v50, %v580_v49  ;;  %v3774_v56 = vpack.c.bf16 %v599_v52, %v598_v51  ;;  %v582_v57 = vld [vmem:[%s4029_s11 + $0x70] sm:$0xff]  ;;  %v583_v58 = vld [vmem:[%s4029_s11 + $0x78] sm:$0xff]  ;;  %v601_v59 = vld [vmem:[%s4030_s12 + $0x8] sm:$0xff] }
  0x60   : > { %2644 = vmatpush3.bf16.msra.mxu0 %v3681_v19  ;;  %2916 = vmatpush3.bf16.msra.mxu1 %v3681_v19  ;;  %v618_v38 = vrot.slane %v617_v35, 2  ;;  %v603_v60 = vld [vmem:[%s4030_s12 + $0x18] sm:$0xff]  ;;  %v3791_v62 = vpack.c.bf16 %v583_v58, %v582_v57  ;;  %v600_v0 = vld [vmem:[%s4030_s12] sm:$0xff]  ;;  %v602_v1 = vld [vmem:[%s4030_s12 + $0x10] sm:$0xff]  ;;  %p3336_p2 = pnand %p3335_p12, %p4061_p1 }
  0x61   : > { %2646 = vmatprep.subr.bf16.mxu0 %v3685_v20  ;;  %2918 = vmatprep.subr.bf16.mxu1 %v3685_v20  ;;  %v613_v54 = vadd.f32 %v612_v45, %v611_v36  ;;  %v3794_v63 = vpack.c.bf16 %v603_v60, %v601_v59  ;;  %v3805_v4 = vpack.c.bf16 %v602_v1, %v600_v0  ;;  %v605_v5 = vld [vmem:[%s4030_s12 + $0x28] sm:$0xff]  ;;  %v607_v6 = vld [vmem:[%s4030_s12 + $0x38] sm:$0xff]  ;;  %v604_v10 = vld [vmem:[%s4030_s12 + $0x20] sm:$0xff] }
  0x62   : > { %v619_v44 = vadd.f32 %v618_v38, %v617_v35  ;;  %v3817_v9 = vpack.c.bf16 %v607_v6, %v605_v5  ;;  %v606_v11 = vld [vmem:[%s4030_s12 + $0x30] sm:$0xff]  ;;  %566 = vst.msk [vmem:[#allocation2 + $0x11] ss:$8 sm:$0x3] %vm561_vm0, %v3410_v16  ;;  %v1007_v52 = vld [vmem:[#allocation3 + $0x18] sm:$0xff]  ;;  %v1004_v57 = vld [vmem:[#allocation3] sm:$0xff]  ;;  %p3337_p3 = pneg %p3336_p2 }
  0x63   : > { %v614_v61 = vrot.slane %v613_v54, 1  ;;  %v3825_v12 = vpack.c.bf16 %v606_v11, %v604_v10  ;;  %v1006_v58 = vld [vmem:[#allocation3 + $0x10] sm:$0xff]  ;;  %v1009_v1 = vld [vmem:[#allocation3 + $0x28] sm:$0xff]  ;;  %v1008_v6 = vld [vmem:[#allocation3 + $0x20] sm:$0xff] }
  0x64   : > { %2648 = vmatpush3.bf16.msra.mxu0 %v3708_v28  ;;  %2920 = vmatpush3.bf16.msra.mxu1 %v3708_v28  ;;  %v620_v47 = vrot.slane %v619_v44, 1  ;;  %v1010_v10 = vld [vmem:[#allocation3 + $0x30] sm:$0xff]  ;;  %v1013_v15 = vld [vmem:[#allocation3 + $0x48] sm:$0xff] }
  0x65   : > { %2650 = vmatprep.subr.bf16.mxu0 %v3713_v30  ;;  %2922 = vmatprep.subr.bf16.mxu1 %v3713_v30  ;;  %v615_v2 = vadd.f32 %v614_v61, %v613_v54  ;;  %v2715_v61 = vpack.c.bf16 %v1006_v58, %v1004_v57  ;;  %v2719_v11 = vpack.c.bf16 %v1010_v10, %v1008_v6  ;;  %v1028_v57 = vld [vmem:[#allocation3 + $0xc0] sm:$0xff]  ;;  %v1030_v58 = vld [vmem:[#allocation3 + $0xd0] sm:$0xff]  ;;  %v1037_v6 = vld [vmem:[#allocation3 + $0x108] sm:$0xff] }
  0x66   : > { %v621_v53 = vadd.f32 %v620_v47, %v619_v44  ;;  %v1039_v10 = vld [vmem:[#allocation3 + $0x118] sm:$0xff] }
  0x68   : > { %2652 = vmatpush3.bf16.msra.mxu0 %v3731_v37  ;;  %2924 = vmatpush3.bf16.msra.mxu1 %v3731_v37 }
  0x69   : > { %2654 = vmatprep.subr.bf16.mxu0 %v3735_v39  ;;  %2926 = vmatprep.subr.bf16.mxu1 %v3735_v39 }
  0x6a   : > { %686 = vmatprep.mubr.f32.mxu0 %v621_v53 }
  0x6c   : > { %2656 = vmatpush3.bf16.msra.mxu0 %v3751_v46  ;;  %2928 = vmatpush3.bf16.msra.mxu1 %v3751_v46 }
  0x6d   : > { %2658 = vmatprep.subr.bf16.mxu0 %v3755_v48  ;;  %2930 = vmatprep.subr.bf16.mxu1 %v3755_v48 }
  0x70   : > { %2660 = vmatpush3.bf16.msra.mxu0 %v3771_v55  ;;  %2932 = vmatpush3.bf16.msra.mxu1 %v3771_v55 }
  0x71   : > { %2662 = vmatprep.subr.bf16.mxu0 %v3774_v56  ;;  %2934 = vmatprep.subr.bf16.mxu1 %v3774_v56 }
  0x74   : > { %2664 = vmatpush3.bf16.msra.mxu0 %v3791_v62  ;;  %2936 = vmatpush3.bf16.msra.mxu1 %v3791_v62 }
  0x75   : > { %2666 = vmatprep.subr.bf16.mxu0 %v3794_v63  ;;  %2938 = vmatprep.subr.bf16.mxu1 %v3794_v63 }
  0x77   : > { %687 = vmatmul.mubr.f32.vlgmr.msra.gmra.mrb[0].mxu0 %v615_v2  ;;  %v1011_v2 = vld [vmem:[#allocation3 + $0x38] sm:$0xff] }
  0x78   : > { %2668 = vmatpush1.bf16.msra.mxu0 %v3805_v4  ;;  %761 = vmatprep.mubr.f32.mxu0 %v3410_v16  ;;  %v2717_v5 = vpack.c.bf16 %v1011_v2, %v1009_v1  ;;  %v1032_v1 = vld [vmem:[#allocation3 + $0xe0] sm:$0xff]  ;;  %v1034_v2 = vld [vmem:[#allocation3 + $0xf0] sm:$0xff] }
  0x79   : > { %2670 = vmatprep.subr.bf16.mxu0 %v3817_v9 }
  0x7c   : > { %2672 = vmatpush1.bf16.msra.mxu0 %v3825_v12 }
  0x7d   : > { %2674 = vmatprep.subr.bf16.mxu0 %v3625_v3 }
 0x14a   : > { %v2525_v17 = vpop.f32.mrb[0].mxu0 }
 0x14b   : > { %v2526_v18 = vpop.f32.mrb[1].mxu0 }
 0x14c   : > { %v2527_v21 = vadd.f32 %v2526_v18, %v2525_v17  ;;  %v1015_v17 = vld [vmem:[#allocation3 + $0x58] sm:$0xff] }
 0x14d   : > { %v2721_v18 = vpack.c.bf16 %v1015_v17, %v1013_v15  ;;  %v1036_v15 = vld [vmem:[#allocation3 + $0x100] sm:$0xff]  ;;  %v1038_v17 = vld [vmem:[#allocation3 + $0x110] sm:$0xff] }
 0x14e   : > { %v692_v22 = vmul.f32 0.015625, %v2527_v21  ;;  %v1012_v21 = vld [vmem:[#allocation3 + $0x40] sm:$0xff] }
 0x150   : > { %2478 = vmatmul.mubr.msk.f32.vlgmr.msra.gmra.mrb[2].mxu0 %vm693_vm1, %v692_v22  ;;  %v1014_v22 = vld [vmem:[#allocation3 + $0x50] sm:$0xff] }
 0x151   : > { %2676 = vmatpush3.bf16.msra.mxu0 %v3636_v7 }
 0x152   : > { %2678 = vmatprep.subr.bf16.mxu0 %v3638_v8 }
 0x155   : > { %2680 = vmatpush3.bf16.msra.mxu0 %v3655_v13 }
 0x156   : > { %2682 = vmatprep.subr.bf16.mxu0 %v3660_v14 }
 0x159   : > { %2684 = vmatpush3.bf16.msra.mxu0 %v3681_v19 }
 0x15a   : > { %2686 = vmatprep.subr.bf16.mxu0 %v3685_v20 }
 0x15d   : > { %2688 = vmatpush3.bf16.msra.mxu0 %v3708_v28 }
 0x15e   : > { %2690 = vmatprep.subr.bf16.mxu0 %v3713_v30 }
 0x161   : > { %2692 = vmatpush3.bf16.msra.mxu0 %v3731_v37 }
 0x162   : > { %2694 = vmatprep.subr.bf16.mxu0 %v3735_v39 }
 0x165   : > { %2696 = vmatpush3.bf16.msra.mxu0 %v3751_v46 }
 0x166   : > { %2698 = vmatprep.subr.bf16.mxu0 %v3755_v48 }
 0x169   : > { %2700 = vmatpush3.bf16.msra.mxu0 %v3771_v55 }
 0x16a   : > { %2702 = vmatprep.subr.bf16.mxu0 %v3774_v56 }
 0x16d   : > { %2704 = vmatpush3.bf16.msra.mxu0 %v3791_v62 }
 0x16e   : > { %2706 = vmatprep.subr.bf16.mxu0 %v3794_v63 }
 0x223   : > { %v763_v27 = vpop.f32.mrb[2].mxu0 }
 0x224   : > { %v771_v29 = vrot.slane %v763_v27, %v3853_v24  ;;  %v765_v31 = vpop.f32.mrb[3].mxu0  ;;  %v2723_v27 = vpack.c.bf16 %v1014_v22, %v1012_v21  ;;  %v1041_v21 = vld [vmem:[#allocation3 + $0x128] sm:$0xff]  ;;  %v1043_v22 = vld [vmem:[#allocation3 + $0x138] sm:$0xff] }
 0x225   : > { %v775_v32 = vrot.slane %v765_v31, %v3853_v24  ;;  %v1019_v31 = vld [vmem:[#allocation3 + $0x78] sm:$0xff] }
 0x226   : > { %v3858_v33 = vsub.f32 %v3701_v25, %v771_v29  ;;  %v1017_v29 = vld [vmem:[#allocation3 + $0x68] sm:$0xff] }
 0x227   : > { %v3861_v34 = vsub.f32 %v3704_v26, %v775_v32  ;;  %v1005_v26 = vld [vmem:[#allocation3 + $0x8] sm:$0xff]  ;;  %v2725_v32 = vpack.c.bf16 %v1019_v31, %v1017_v29  ;;  %v1040_v29 = vld [vmem:[#allocation3 + $0x120] sm:$0xff]  ;;  %v1042_v31 = vld [vmem:[#allocation3 + $0x130] sm:$0xff] }
 0x228   : > { %v778_v35 = vmul.f32 %v3858_v33, %v3858_v33  ;;  %v2713_v53 = vpack.c.bf16 %v1007_v52, %v1005_v26  ;;  %v1029_v52 = vld [vmem:[#allocation3 + $0xc8] sm:$0xff] }
 0x229   : > { %v779_v36 = vmul.f32 %v3861_v34, %v3861_v34 }
 0x22a   : > { %v780_v38 = vrot.slane %v778_v35, 4 }
 0x22b   : > { %v786_v40 = vrot.slane %v779_v36, 4 }
 0x22c   : > { %v781_v41 = vadd.f32 %v780_v38, %v778_v35  ;;  %v1016_v35 = vld [vmem:[#allocation3 + $0x60] sm:$0xff] }
 0x22d   : > { %v787_v42 = vadd.f32 %v786_v40, %v779_v36  ;;  %v1018_v36 = vld [vmem:[#allocation3 + $0x70] sm:$0xff]  ;;  %v1021_v40 = vld [vmem:[#allocation3 + $0x88] sm:$0xff] }
 0x22e   : > { %v782_v43 = vrot.slane %v781_v41, 2  ;;  %v2727_v38 = vpack.c.bf16 %v1018_v36, %v1016_v35  ;;  %v1045_v35 = vld [vmem:[#allocation3 + $0x148] sm:$0xff]  ;;  %v1047_v36 = vld [vmem:[#allocation3 + $0x158] sm:$0xff] }
 0x22f   : > { %v788_v44 = vrot.slane %v787_v42, 2 }
 0x230   : > { %v783_v45 = vadd.f32 %v782_v43, %v781_v41  ;;  %v1023_v41 = vld [vmem:[#allocation3 + $0x98] sm:$0xff]  ;;  %v1020_v43 = vld [vmem:[#allocation3 + $0x80] sm:$0xff] }
 0x231   : > { %v789_v47 = vadd.f32 %v788_v44, %v787_v42  ;;  %v2729_v42 = vpack.c.bf16 %v1023_v41, %v1021_v40  ;;  %v1022_v44 = vld [vmem:[#allocation3 + $0x90] sm:$0xff]  ;;  %v1044_v40 = vld [vmem:[#allocation3 + $0x140] sm:$0xff] }
 0x232   : > { %v784_v49 = vrot.slane %v783_v45, 1  ;;  %v1046_v41 = vld [vmem:[#allocation3 + $0x150] sm:$0xff] }
 0x233   : > { %v790_v25 = vrot.slane %v789_v47, 1 }
 0x234   : > { %v785_v51 = vadd.f32 %v784_v49, %v783_v45  ;;  %v2731_v45 = vpack.c.bf16 %v1022_v44, %v1020_v43  ;;  %v1027_v49 = vld [vmem:[#allocation3 + $0xb8] sm:$0xff]  ;;  %v1049_v43 = vld [vmem:[#allocation3 + $0x168] sm:$0xff] }
 0x235   : > { %v791_v50 = vadd.f32 %v790_v25, %v789_v47  ;;  %v1025_v47 = vld [vmem:[#allocation3 + $0xa8] sm:$0xff]  ;;  %v1051_v44 = vld [vmem:[#allocation3 + $0x178] sm:$0xff] }
 0x236   : > { %v2733_v25 = vpack.c.bf16 %v1027_v49, %v1025_v47  ;;  %v1048_v47 = vld [vmem:[#allocation3 + $0x160] sm:$0xff]  ;;  %v1050_v49 = vld [vmem:[#allocation3 + $0x170] sm:$0xff] }
 0x237   : > { %856 = vmatprep.mubr.f32.mxu0 %v791_v50  ;;  %v1024_v50 = vld [vmem:[#allocation3 + $0xa0] sm:$0xff] }
 0x238   : > { %857 = vmatmul.mubr.f32.vlgmr.msra.gmra.mrb[4].mxu0 %v785_v51  ;;  %v1026_v51 = vld [vmem:[#allocation3 + $0xb0] sm:$0xff] }
 0x239   : > { %2708 = vmatpush1.bf16.msra.mxu0 %v3805_v4  ;;  %930 = vmatprep.mubr.f32.mxu0 %v3410_v16  ;;  %v2735_v26 = vpack.c.bf16 %v1026_v51, %v1024_v50  ;;  %v1053_v50 = vld [vmem:[#allocation3 + $0x188] sm:$0xff]  ;;  %v1055_v51 = vld [vmem:[#allocation3 + $0x198] sm:$0xff] }
 0x23a   : > { %2710 = vmatprep.subr.bf16.mxu0 %v3817_v9 }
 0x23d   : > { %2712 = vmatpush1.bf16.msra.mxu0 %v3825_v12 }
 0x23e   : > { %2714 = vmatprep.subr.bf16.mxu0 %v2713_v53  ;;  %v1031_v53 = vld [vmem:[#allocation3 + $0xd8] sm:$0xff] }
 0x30b   : > { %v2560_v54 = vpop.f32.mrb[4].mxu0 }
 0x30c   : > { %v2561_v59 = vpop.f32.mrb[5].mxu0 }
 0x30d   : > { %v2562_v60 = vadd.f32 %v2561_v59, %v2560_v54  ;;  %v2737_v54 = vpack.c.bf16 %v1031_v53, %v1029_v52  ;;  %v2739_v59 = vpack.c.bf16 %v1030_v58, %v1028_v57  ;;  %v1052_v52 = vld [vmem:[#allocation3 + $0x180] sm:$0xff]  ;;  %v1054_v53 = vld [vmem:[#allocation3 + $0x190] sm:$0xff]  ;;  %v1057_v57 = vld [vmem:[#allocation3 + $0x1a8] sm:$0xff] }
 0x30e   : > { %v1059_v58 = vld [vmem:[#allocation3 + $0x1b8] sm:$0xff] }
 0x30f   : > { %v862_v0 = vmul.f32 0.015625, %v2562_v60  ;;  %v1033_v60 = vld [vmem:[#allocation3 + $0xe8] sm:$0xff] }
 0x311   : > { %2479 = vmatmul.mubr.msk.f32.vlgmr.msra.gmra.mrb[6].mxu0 %vm693_vm1, %v862_v0 }
 0x312   : > { %2716 = vmatpush1.bf16.msra.mxu0 %v2715_v61  ;;  %v1035_v61 = vld [vmem:[#allocation3 + $0xf8] sm:$0xff] }
 0x313   : > { %2718 = vmatprep.subr.bf16.mxu0 %v2717_v5  ;;  %v2741_v0 = vpack.c.bf16 %v1035_v61, %v1033_v60  ;;  %v2743_v5 = vpack.c.bf16 %v1034_v2, %v1032_v1  ;;  %v1056_v60 = vld [vmem:[#allocation3 + $0x1a0] sm:$0xff]  ;;  %v1058_v61 = vld [vmem:[#allocation3 + $0x1b0] sm:$0xff]  ;;  %v1061_v1 = vld [vmem:[#allocation3 + $0x1c8] sm:$0xff] }
 0x314   : > { %v1063_v2 = vld [vmem:[#allocation3 + $0x1d8] sm:$0xff] }
 0x316   : > { %2720 = vmatpush1.bf16.msra.mxu0 %v2719_v11  ;;  %v2745_v11 = vpack.c.bf16 %v1039_v10, %v1037_v6  ;;  %v1060_v6 = vld [vmem:[#allocation3 + $0x1c0] sm:$0xff]  ;;  %v1062_v10 = vld [vmem:[#allocation3 + $0x1d0] sm:$0xff] }
 0x317   : > { %2722 = vmatprep.subr.bf16.mxu0 %v2721_v18  ;;  %v2747_v18 = vpack.c.bf16 %v1038_v17, %v1036_v15  ;;  %v1065_v15 = vld [vmem:[#allocation3 + $0x1e8] sm:$0xff]  ;;  %v1067_v17 = vld [vmem:[#allocation3 + $0x1f8] sm:$0xff] }
 0x31a   : > { %2724 = vmatpush1.bf16.msra.mxu0 %v2723_v27  ;;  %v2749_v27 = vpack.c.bf16 %v1043_v22, %v1041_v21  ;;  %v2773_v21 = vpack.c.bf16 %v1067_v17, %v1065_v15  ;;  %v1066_v22 = vld [vmem:[#allocation3 + $0x1f0] sm:$0xff]  ;;  %v1157_v15 = vld [vmem:[#allocation3 + $0x200] sm:$0xff] }
 0x31b   : > { %2726 = vmatprep.subr.bf16.mxu0 %v2725_v32  ;;  %v2751_v32 = vpack.c.bf16 %v1042_v31, %v1040_v29  ;;  %v1158_v29 = vld [vmem:[#allocation3 + $0x208] sm:$0xff]  ;;  %v1160_v31 = vld [vmem:[#allocation3 + $0x218] sm:$0xff]  ;;  %v1159_v17 = vld [vmem:[#allocation3 + $0x210] sm:$0xff] }
 0x31e   : > { %2728 = vmatpush1.bf16.msra.mxu0 %v2727_v38  ;;  %v2753_v38 = vpack.c.bf16 %v1047_v36, %v1045_v35 }
 0x31f   : > { %2730 = vmatprep.subr.bf16.mxu0 %v2729_v42  ;;  %v2755_v42 = vpack.c.bf16 %v1046_v41, %v1044_v40 }
 0x322   : > { %2732 = vmatpush1.bf16.msra.mxu0 %v2731_v45  ;;  %v2757_v45 = vpack.c.bf16 %v1051_v44, %v1049_v43  ;;  %v3875_v43 = vsub.s32 1, %v3850_v23  ;;  %v608_v44 = vld [vmem:[%s4021_s3] sm:$0x3] }
 0x323   : > { %2734 = vmatprep.subr.bf16.mxu0 %v2733_v25  ;;  %v2759_v25 = vpack.c.bf16 %v1050_v49, %v1048_v47  ;;  %v955_v47 = vrot.slane %v608_v44, %v3853_v24 }
 0x326   : > { %2736 = vmatpush1.bf16.msra.mxu0 %v2735_v26  ;;  %v2761_v26 = vpack.c.bf16 %v1055_v51, %v1053_v50 }
 0x327   : > { %2738 = vmatprep.subr.bf16.mxu0 %v2737_v54  ;;  %v2763_v54 = vpack.c.bf16 %v1054_v53, %v1052_v52 }
 0x32a   : > { %2740 = vmatpush1.bf16.msra.mxu0 %v2739_v59  ;;  %v2765_v59 = vpack.c.bf16 %v1059_v58, %v1057_v57 }
 0x32b   : > { %2742 = vmatprep.subr.bf16.mxu0 %v2741_v0  ;;  %v2767_v0 = vpack.c.bf16 %v1058_v61, %v1056_v60 }
 0x32e   : > { %2744 = vmatpush1.bf16.msra.mxu0 %v2743_v5  ;;  %v2769_v5 = vpack.c.bf16 %v1063_v2, %v1061_v1 }
 0x32f   : > { %2746 = vmatprep.subr.bf16.mxu0 %v2745_v11  ;;  %v2771_v11 = vpack.c.bf16 %v1062_v10, %v1060_v6 }
 0x332   : > { %2748 = vmatpush1.bf16.msra.mxu0 %v2747_v18  ;;  %v1064_v18 = vld [vmem:[#allocation3 + $0x1e0] sm:$0xff] }
 0x333   : > { %2750 = vmatprep.subr.bf16.mxu0 %v2749_v27  ;;  %v2775_v27 = vpack.c.bf16 %v1066_v22, %v1064_v18  ;;  %v1162_v18 = vld [vmem:[#allocation3 + $0x228] sm:$0xff]  ;;  %v2779_v22 = vpack.c.bf16 %v1159_v17, %v1157_v15 }
 0x336   : > { %2752 = vmatpush1.bf16.msra.mxu0 %v2751_v32  ;;  %v2777_v32 = vpack.c.bf16 %v1160_v31, %v1158_v29  ;;  %v1163_v29 = vld [vmem:[#allocation3 + $0x230] sm:$0xff] }
 0x337   : > { %2754 = vmatprep.subr.bf16.mxu0 %v2753_v38 }
 0x33a   : > { %2756 = vmatpush1.bf16.msra.mxu0 %v2755_v42 }
 0x33b   : > { %2758 = vmatprep.subr.bf16.mxu0 %v2757_v45  ;;  %v609_v45 = vld [vmem:[%s4022_s4] sm:$0x3] }
 0x33c   : > { %v972_v52 = vrot.slane %v609_v45, %v3875_v43 }
 0x33e   : > { %2760 = vmatpush1.bf16.msra.mxu0 %v2759_v25  ;;  %v959_v25 = vrot.slane %v608_v44, %v3875_v43  ;;  %v1168_v44 = vld [vmem:[#allocation3 + $0x258] sm:$0xff] }
 0x33f   : > { %2762 = vmatprep.subr.bf16.mxu0 %v2761_v26  ;;  %v968_v26 = vrot.slane %v609_v45, %v3853_v24 }
 0x342   : > { %2764 = vmatpush1.bf16.msra.mxu0 %v2763_v54 }
 0x343   : > { %2766 = vmatprep.subr.bf16.mxu0 %v2765_v59 }
 0x346   : > { %2768 = vmatpush1.bf16.msra.mxu0 %v2767_v0 }
 0x347   : > { %2770 = vmatprep.subr.bf16.mxu0 %v2769_v5 }
 0x34a   : > { %2772 = vmatpush1.bf16.msra.mxu0 %v2771_v11 }
 0x34b   : > { %2774 = vmatprep.subr.bf16.mxu0 %v2773_v21  ;;  %v1164_v21 = vld [vmem:[#allocation3 + $0x238] sm:$0xff] }
 0x34e   : > { %2776 = vmatpush1.bf16.msra.mxu0 %v2775_v27  ;;  %v1161_v27 = vld [vmem:[#allocation3 + $0x220] sm:$0xff] }
 0x34f   : > { %2778 = vmatprep.subr.bf16.mxu0 %v2777_v32 }
 0x3e4   : > { %v932_v35 = vpop.f32.mrb[6].mxu0 }
 0x3e5   : > { %v940_v36 = vrot.slane %v932_v35, %v3853_v24  ;;  %v934_v38 = vpop.f32.mrb[7].mxu0 }
 0x3e6   : > { %v944_v40 = vrot.slane %v934_v38, %v3853_v24 }
 0x3e7   : > { %v945_v41 = vadd.f32 1e-05, %v940_v36  ;;  %v2781_v36 = vpack.c.bf16 %v1164_v21, %v1162_v18  ;;  %v1181_v18 = vld [vmem:[#allocation3 + $0x2c0] sm:$0xff]  ;;  %v1183_v21 = vld [vmem:[#allocation3 + $0x2d0] sm:$0xff] }
 0x3e8   : > { %v946_v42 = vadd.f32 1e-05, %v944_v40 }
 0x3e9   : > { %3252 = vrsqrt.f32 %v945_v41 }
 0x3ea   : > { %3254 = vrsqrt.f32 %v946_v42  ;;  %v1166_v42 = vld [vmem:[#allocation3 + $0x248] sm:$0xff] }
 0x3f3   : > { %v3253_v49 = vpop.eup %3252 }
 0x3f4   : > { %v3255_v50 = vpop.eup %3254  ;;  %v949_v51 = vmul.f32 %v3253_v49, %v3858_v33  ;;  %v2785_v49 = vpack.c.bf16 %v1168_v44, %v1166_v42  ;;  %v1189_v42 = vld [vmem:[#allocation3 + $0x300] sm:$0xff]  ;;  %v1191_v44 = vld [vmem:[#allocation3 + $0x310] sm:$0xff] }
 0x3f5   : > { %v950_v23 = vmul.f32 %v3255_v50, %v3861_v34  ;;  %v1167_v50 = vld [vmem:[#allocation3 + $0x250] sm:$0xff] }
 0x3f6   : > { %v962_v53 = vmul.f32 %v955_v47, %v949_v51  ;;  %v2783_v47 = vpack.c.bf16 %v1163_v29, %v1161_v27  ;;  %v1170_v51 = vld [vmem:[#allocation3 + $0x268] sm:$0xff]  ;;  %v1188_v27 = vld [vmem:[#allocation3 + $0x2f8] sm:$0xff]  ;;  %v2803_v29 = vpack.c.bf16 %v1183_v21, %v1181_v18  ;;  %v1209_v21 = vld [vmem:[#allocation3 + $0x3a0] sm:$0xff] }
 0x3f7   : > { %v963_v54 = vmul.f32 %v959_v25, %v950_v23  ;;  %v1165_v25 = vld [vmem:[#allocation3 + $0x240] sm:$0xff] }
 0x3f8   : > { %v975_v57 = vadd.f32 %v968_v26, %v962_v53  ;;  %v1172_v26 = vld [vmem:[#allocation3 + $0x278] sm:$0xff]  ;;  %v2787_v23 = vpack.c.bf16 %v1167_v50, %v1165_v25  ;;  %v1169_v53 = vld [vmem:[#allocation3 + $0x260] sm:$0xff] }
 0x3f9   : > { %v976_v58 = vadd.f32 %v972_v52, %v963_v54  ;;  %v2789_v52 = vpack.c.bf16 %v1172_v26, %v1170_v51  ;;  %v1171_v54 = vld [vmem:[#allocation3 + $0x270] sm:$0xff]  ;;  %v1193_v50 = vld [vmem:[#allocation3 + $0x320] sm:$0xff]  ;;  %v1198_v26 = vld [vmem:[#allocation3 + $0x348] sm:$0xff] }
 0x3fa   : > { %v2480_v59 = vmul.f32 -1.442695, %v975_v57  ;;  %v1195_v51 = vld [vmem:[#allocation3 + $0x330] sm:$0xff] }
 0x3fb   : > { %v2481_v60 = vmul.f32 -1.442695, %v976_v58 }
 0x3fc   : > { %3256 = vpow2.f32 %v2480_v59  ;;  %v2791_v59 = vpack.c.bf16 %v1171_v54, %v1169_v53  ;;  %v1197_v54 = vld [vmem:[#allocation3 + $0x340] sm:$0xff] }
 0x3fd   : > { %3258 = vpow2.f32 %v2481_v60 }
 0x406   : > { %v3257_v61 = vpop.eup %3256 }
 0x407   : > { %v3259_v0 = vpop.eup %3258  ;;  %v983_v1 = vadd.f32 1.0, %v3257_v61  ;;  %v1173_v61 = vld [vmem:[#allocation3 + $0x280] sm:$0xff] }
 0x408   : > { %v984_v2 = vadd.f32 1.0, %v3259_v0  ;;  %v1175_v0 = vld [vmem:[#allocation3 + $0x290] sm:$0xff] }
 0x409   : > { %3260 = vrcp.f32 %v983_v1  ;;  %v1178_v1 = vld [vmem:[#allocation3 + $0x2a8] sm:$0xff] }
 0x40a   : > { %3262 = vrcp.f32 %v984_v2  ;;  %v1180_v2 = vld [vmem:[#allocation3 + $0x2b8] sm:$0xff] }
 0x413   : > { %v3261_v33 = vpop.eup %3260 }
 0x414   : > { %v3263_v5 = vpop.eup %3262  ;;  %v989_v6 = vmul.f32 %v3261_v33, %v975_v57  ;;  %v1174_v57 = vld [vmem:[#allocation3 + $0x288] sm:$0xff]  ;;  %v2795_v33 = vpack.c.bf16 %v1175_v0, %v1173_v61  ;;  %v1201_v0 = vld [vmem:[#allocation3 + $0x360] sm:$0xff] }
 0x415   : > { %v990_v34 = vmul.f32 %v3263_v5, %v976_v58  ;;  %v1176_v58 = vld [vmem:[#allocation3 + $0x298] sm:$0xff]  ;;  %v2797_v5 = vpack.c.bf16 %v1180_v2, %v1178_v1  ;;  %v1203_v1 = vld [vmem:[#allocation3 + $0x370] sm:$0xff]  ;;  %v1206_v2 = vld [vmem:[#allocation3 + $0x388] sm:$0xff] }
 0x416   : > { %v994_v10 = vrot.slane %v989_v6, 7  ;;  %v2793_v60 = vpack.c.bf16 %v1176_v58, %v1174_v57  ;;  %v1177_v6 = vld [vmem:[#allocation3 + $0x2a0] sm:$0xff]  ;;  %v1199_v57 = vld [vmem:[#allocation3 + $0x350] sm:$0xff]  ;;  %v1202_v58 = vld [vmem:[#allocation3 + $0x368] sm:$0xff] }
 0x417   : > { %v995_v11 = vrot.slane %v990_v34, 7  ;;  %v1179_v34 = vld [vmem:[#allocation3 + $0x2b0] sm:$0xff] }
 0x418   : > { %998 = vst [vmem:[#allocation2] sm:$0xfe] %v994_v10  ;;  %1000 = vst [vmem:[#allocation2 + $0x10] sm:$0x1] %v994_v10  ;;  %v1182_v10 = vld [vmem:[#allocation3 + $0x2c8] sm:$0xff]  ;;  %v2799_v15 = vpack.c.bf16 %v1179_v34, %v1177_v6  ;;  %v1205_v34 = vld [vmem:[#allocation3 + $0x380] sm:$0xff] }
 0x419   : > { %999 = vst [vmem:[#allocation2 + $0x8] sm:$0xfe] %v995_v11  ;;  %1001 = vst [vmem:[#allocation2 + $0x18] sm:$0x1] %v995_v11  ;;  %v1184_v11 = vld [vmem:[#allocation3 + $0x2d8] sm:$0xff] }
 0x41a   : > { %v2801_v17 = vpack.c.bf16 %v1184_v11, %v1182_v10  ;;  %v1207_v10 = vld [vmem:[#allocation3 + $0x390] sm:$0xff]  ;;  %v1210_v11 = vld [vmem:[#allocation3 + $0x3a8] sm:$0xff] }
 0x41f   : > { %v1002_v38 = vld [vmem:[#allocation2] sm:$0xff] }
 0x420   : > { %v1003_v31 = vld [vmem:[#allocation2 + $0x8] sm:$0xff]  ;;  %v1155_v35 = vld [vmem:[#allocation2 + $0x18] sm:$0x1] }
 0x421   : > { %v1153_v32 = vld [vmem:[#allocation2 + $0x8] sm:$0xfe]  ;;  %1132 = vmatprep.mubr.f32.mxu0 %v1003_v31  ;;  %v1230_v41 = vrot.slane %v1155_v35, 1  ;;  %v1187_v35 = vld [vmem:[#allocation3 + $0x2f0] sm:$0xff] }
 0x422   : > { %v1229_v40 = vrot.slane %v1153_v32, 1  ;;  %1133 = vmatmul.mubr.f32.vlgmr.msra.gmra.mrb[8].mxu0 %v1002_v38  ;;  %v1185_v32 = vld [vmem:[#allocation3 + $0x2e0] sm:$0xff]  ;;  %v1192_v38 = vld [vmem:[#allocation3 + $0x318] sm:$0xff] }
 0x423   : > { %2780 = vmatpush1.bf16.msra.mxu0 %v2779_v22  ;;  %v1186_v22 = vld [vmem:[#allocation3 + $0x2e8] sm:$0xff] }
 0x424   : > { %v1231_v45 = vsel %vm1225_vm2, %v1229_v40, %v1230_v41  ;;  %2782 = vmatprep.subr.bf16.mxu0 %v2781_v36  ;;  %v2805_v31 = vpack.c.bf16 %v1188_v27, %v1186_v22  ;;  %v1190_v36 = vld [vmem:[#allocation3 + $0x308] sm:$0xff]  ;;  %v2807_v40 = vpack.c.bf16 %v1187_v35, %v1185_v32  ;;  %v1211_v22 = vld [vmem:[#allocation3 + $0x3b0] sm:$0xff]  ;;  %v1213_v35 = vld [vmem:[#allocation3 + $0x3c0] sm:$0xff] }
 0x425   : > { %1298 = vmatprep.mubr.f32.mxu0 %v1231_v45  ;;  %v2809_v41 = vpack.c.bf16 %v1192_v38, %v1190_v36  ;;  %v1194_v45 = vld [vmem:[#allocation3 + $0x328] sm:$0xff]  ;;  %v1215_v36 = vld [vmem:[#allocation3 + $0x3d0] sm:$0xff] }
 0x426   : > { %v1214_v27 = vld [vmem:[#allocation3 + $0x3c8] sm:$0xff] }
 0x427   : > { %2784 = vmatpush1.bf16.msra.mxu0 %v2783_v47  ;;  %v1196_v47 = vld [vmem:[#allocation3 + $0x338] sm:$0xff]  ;;  %v1218_v38 = vld [vmem:[#allocation3 + $0x3e8] sm:$0xff] }
 0x428   : > { %2786 = vmatprep.subr.bf16.mxu0 %v2785_v49  ;;  %v2811_v49 = vpack.c.bf16 %v1191_v44, %v1189_v42  ;;  %v2813_v25 = vpack.c.bf16 %v1196_v47, %v1194_v45  ;;  %v1217_v44 = vld [vmem:[#allocation3 + $0x3e0] sm:$0xff]  ;;  %v1219_v45 = vld [vmem:[#allocation3 + $0x3f0] sm:$0xff]  ;;  %v1313_v47 = vld [vmem:[#allocation3 + $0x408] sm:$0xff] }
 0x42b   : > { %2788 = vmatpush1.bf16.msra.mxu0 %v2787_v23  ;;  %v1200_v23 = vld [vmem:[#allocation3 + $0x358] sm:$0xff] }
 0x42c   : > { %2790 = vmatprep.subr.bf16.mxu0 %v2789_v52  ;;  %v2815_v52 = vpack.c.bf16 %v1195_v51, %v1193_v50  ;;  %v2817_v53 = vpack.c.bf16 %v1200_v23, %v1198_v26  ;;  %v1154_v50 = vld [vmem:[#allocation2 + $0x10] sm:$0x1]  ;;  %v2839_v51 = vpack.c.bf16 %v1219_v45, %v1217_v44  ;;  %v1308_v26 = vld [vmem:[#allocation2 + $0x8] sm:$0xfc]  ;;  %v1310_v23 = vld [vmem:[#allocation2 + $0x18] sm:$0x3] }
 0x42d   : > { %v1330_v44 = vld [vmem:[#allocation3 + $0x490] sm:$0xff]  ;;  %v1333_v45 = vld [vmem:[#allocation3 + $0x4a8] sm:$0xff] }
 0x42f   : > { %2792 = vmatpush1.bf16.msra.mxu0 %v2791_v59  ;;  %v1204_v59 = vld [vmem:[#allocation3 + $0x378] sm:$0xff] }
 0x430   : > { %2794 = vmatprep.subr.bf16.mxu0 %v2793_v60  ;;  %v2819_v60 = vpack.c.bf16 %v1199_v57, %v1197_v54  ;;  %v2821_v61 = vpack.c.bf16 %v1204_v59, %v1202_v58  ;;  %v1314_v54 = vld [vmem:[#allocation3 + $0x410] sm:$0xff]  ;;  %v1227_v58 = vrot.slane %v1154_v50, 1  ;;  %v1317_v59 = vld [vmem:[#allocation3 + $0x428] sm:$0xff]  ;;  %v1332_v50 = vld [vmem:[#allocation3 + $0x4a0] sm:$0xff] }
 0x433   : > { %2796 = vmatpush1.bf16.msra.mxu0 %v2795_v33  ;;  %v1208_v33 = vld [vmem:[#allocation3 + $0x398] sm:$0xff] }
 0x434   : > { %2798 = vmatprep.subr.bf16.mxu0 %v2797_v5  ;;  %v2823_v5 = vpack.c.bf16 %v1203_v1, %v1201_v0  ;;  %v2825_v6 = vpack.c.bf16 %v1208_v33, %v1206_v2  ;;  %v1385_v0 = vrot.slane %v1310_v23, 2  ;;  %v1316_v33 = vld [vmem:[#allocation3 + $0x420] sm:$0xff]  ;;  %v1339_v23 = vld [vmem:[#allocation3 + $0x4d8] sm:$0xff] }
 0x437   : > { %2800 = vmatpush1.bf16.msra.mxu0 %v2799_v15  ;;  %v1212_v15 = vld [vmem:[#allocation3 + $0x3b8] sm:$0xff] }
 0x438   : > { %2802 = vmatprep.subr.bf16.mxu0 %v2801_v17  ;;  %v2827_v17 = vpack.c.bf16 %v1207_v10, %v1205_v34  ;;  %v2829_v18 = vpack.c.bf16 %v1212_v15, %v1210_v11  ;;  %v1321_v34 = vld [vmem:[#allocation3 + $0x448] sm:$0xff]  ;;  %v1323_v10 = vld [vmem:[#allocation3 + $0x458] sm:$0xff] }
 0x43b   : > { %2804 = vmatpush1.bf16.msra.mxu0 %v2803_v29  ;;  %v1216_v29 = vld [vmem:[#allocation3 + $0x3d8] sm:$0xff] }
 0x43c   : > { %2806 = vmatprep.subr.bf16.mxu0 %v2805_v31  ;;  %v2831_v31 = vpack.c.bf16 %v1211_v22, %v1209_v21  ;;  %v2833_v32 = vpack.c.bf16 %v1216_v29, %v1214_v27  ;;  %v1322_v21 = vld [vmem:[#allocation3 + $0x450] sm:$0xff]  ;;  %v1325_v22 = vld [vmem:[#allocation3 + $0x468] sm:$0xff]  ;;  %v1327_v27 = vld [vmem:[#allocation3 + $0x478] sm:$0xff] }
 0x43f   : > { %2808 = vmatpush1.bf16.msra.mxu0 %v2807_v40  ;;  %v1220_v40 = vld [vmem:[#allocation3 + $0x3f8] sm:$0xff] }
 0x440   : > { %2810 = vmatprep.subr.bf16.mxu0 %v2809_v41  ;;  %v2835_v41 = vpack.c.bf16 %v1215_v36, %v1213_v35  ;;  %v2837_v42 = vpack.c.bf16 %v1220_v40, %v1218_v38  ;;  %v1326_v35 = vld [vmem:[#allocation3 + $0x470] sm:$0xff]  ;;  %v1329_v36 = vld [vmem:[#allocation3 + $0x488] sm:$0xff]  ;;  %v1331_v38 = vld [vmem:[#allocation3 + $0x498] sm:$0xff] }
 0x443   : > { %2812 = vmatpush1.bf16.msra.mxu0 %v2811_v49  ;;  %v1315_v49 = vld [vmem:[#allocation3 + $0x418] sm:$0xff] }
 0x444   : > { %2814 = vmatprep.subr.bf16.mxu0 %v2813_v25  ;;  %v1152_v25 = vld [vmem:[#allocation2] sm:$0xfe] }
 0x445   : > { %v1226_v57 = vrot.slane %v1152_v25, 1 }
 0x447   : > { %2816 = vmatpush1.bf16.msra.mxu0 %v2815_v52  ;;  %v2841_v52 = vpack.c.bf16 %v1315_v49, %v1313_v47  ;;  %v1335_v47 = vld [vmem:[#allocation3 + $0x4b8] sm:$0xff] }
 0x448   : > { %2818 = vmatprep.subr.bf16.mxu0 %v2817_v53  ;;  %v1312_v53 = vld [vmem:[#allocation3 + $0x400] sm:$0xff]  ;;  %v2861_v25 = vpack.c.bf16 %v1335_v47, %v1333_v45  ;;  %v1358_v45 = vld [vmem:[#allocation3 + $0x570] sm:$0xff]  ;;  %v1361_v47 = vld [vmem:[#allocation3 + $0x588] sm:$0xff] }
 0x449   : > { %v2843_v1 = vpack.c.bf16 %v1314_v54, %v1312_v53  ;;  %v1336_v54 = vld [vmem:[#allocation3 + $0x4c0] sm:$0xff] }
 0x44b   : > { %2820 = vmatpush1.bf16.msra.mxu0 %v2819_v60  ;;  %v1319_v60 = vld [vmem:[#allocation3 + $0x438] sm:$0xff] }
 0x44c   : > { %2822 = vmatprep.subr.bf16.mxu0 %v2821_v61  ;;  %v1384_v61 = vrot.slane %v1308_v26, 2  ;;  %v2845_v2 = vpack.c.bf16 %v1319_v60, %v1317_v59  ;;  %v1337_v26 = vld [vmem:[#allocation3 + $0x4c8] sm:$0xff]  ;;  %v1343_v59 = vld [vmem:[#allocation3 + $0x4f8] sm:$0xff] }
 0x44d   : > { %v2865_v53 = vpack.c.bf16 %v1339_v23, %v1337_v26  ;;  %v1362_v26 = vld [vmem:[#allocation3 + $0x590] sm:$0xff]  ;;  %v1365_v23 = vld [vmem:[#allocation3 + $0x5a8] sm:$0xff] }
 0x44e   : > { %v1386_v11 = vsel %vm1380_vm3, %v1384_v61, %v1385_v0  ;;  %v1340_v0 = vld [vmem:[#allocation3 + $0x4e0] sm:$0xff] }
 0x44f   : > { %2824 = vmatpush1.bf16.msra.mxu0 %v2823_v5  ;;  %v1318_v5 = vld [vmem:[#allocation3 + $0x430] sm:$0xff] }
 0x450   : > { %2826 = vmatprep.subr.bf16.mxu0 %v2825_v6  ;;  %v1228_v6 = vsel %vm1225_vm2, %v1226_v57, %v1227_v58  ;;  %v2847_v15 = vpack.c.bf16 %v1318_v5, %v1316_v33  ;;  %v1338_v57 = vld [vmem:[#allocation3 + $0x4d0] sm:$0xff]  ;;  %v1341_v58 = vld [vmem:[#allocation3 + $0x4e8] sm:$0xff]  ;;  %v1347_v33 = vld [vmem:[#allocation3 + $0x518] sm:$0xff] }
 0x451   : > { %v2867_v60 = vpack.c.bf16 %v1338_v57, %v1336_v54  ;;  %v2869_v61 = vpack.c.bf16 %v1343_v59, %v1341_v58  ;;  %v1364_v57 = vld [vmem:[#allocation3 + $0x5a0] sm:$0xff]  ;;  %v1366_v58 = vld [vmem:[#allocation3 + $0x5b0] sm:$0xff]  ;;  %v1369_v59 = vld [vmem:[#allocation3 + $0x5c8] sm:$0xff] }
 0x453   : > { %2828 = vmatpush1.bf16.msra.mxu0 %v2827_v17  ;;  %v2849_v17 = vpack.c.bf16 %v1323_v10, %v1321_v34  ;;  %v1344_v34 = vld [vmem:[#allocation3 + $0x500] sm:$0xff]  ;;  %v1346_v10 = vld [vmem:[#allocation3 + $0x510] sm:$0xff] }
 0x454   : > { %2830 = vmatprep.subr.bf16.mxu0 %v2829_v18  ;;  %v1320_v18 = vld [vmem:[#allocation3 + $0x440] sm:$0xff] }
 0x455   : > { %v2851_v29 = vpack.c.bf16 %v1322_v21, %v1320_v18  ;;  %v1348_v21 = vld [vmem:[#allocation3 + $0x520] sm:$0xff] }
 0x457   : > { %2832 = vmatpush1.bf16.msra.mxu0 %v2831_v31  ;;  %v2853_v31 = vpack.c.bf16 %v1327_v27, %v1325_v22  ;;  %v1350_v22 = vld [vmem:[#allocation3 + $0x530] sm:$0xff]  ;;  %v1353_v27 = vld [vmem:[#allocation3 + $0x548] sm:$0xff] }
 0x458   : > { %2834 = vmatprep.subr.bf16.mxu0 %v2833_v32  ;;  %v1324_v32 = vld [vmem:[#allocation3 + $0x460] sm:$0xff] }
 0x459   : > { %v2855_v40 = vpack.c.bf16 %v1326_v35, %v1324_v32  ;;  %v1352_v35 = vld [vmem:[#allocation3 + $0x540] sm:$0xff] }
 0x45b   : > { %2836 = vmatpush1.bf16.msra.mxu0 %v2835_v41  ;;  %v2857_v41 = vpack.c.bf16 %v1331_v38, %v1329_v36  ;;  %v1354_v36 = vld [vmem:[#allocation3 + $0x550] sm:$0xff]  ;;  %v1357_v38 = vld [vmem:[#allocation3 + $0x568] sm:$0xff] }
 0x45c   : > { %2838 = vmatprep.subr.bf16.mxu0 %v2837_v42  ;;  %v1328_v42 = vld [vmem:[#allocation3 + $0x480] sm:$0xff] }
 0x45d   : > { %v2859_v49 = vpack.c.bf16 %v1330_v44, %v1328_v42  ;;  %v1356_v44 = vld [vmem:[#allocation3 + $0x560] sm:$0xff] }
 0x45f   : > { %2840 = vmatpush1.bf16.msra.mxu0 %v2839_v51  ;;  %v1334_v51 = vld [vmem:[#allocation3 + $0x4b0] sm:$0xff] }
 0x460   : > { %2842 = vmatprep.subr.bf16.mxu0 %v2841_v52  ;;  %v2863_v52 = vpack.c.bf16 %v1334_v51, %v1332_v50  ;;  %v1360_v51 = vld [vmem:[#allocation3 + $0x580] sm:$0xff] }
 0x462   : > { %1299 = vmatmul.mubr.f32.vlgmr.msra.gmra.mrb[8].mxu0 %v1228_v6 }
 0x463   : > { %2844 = vmatpush1.bf16.msra.mxu0 %v2843_v1  ;;  %1453 = vmatprep.mubr.f32.mxu0 %v1386_v11  ;;  %v1342_v1 = vld [vmem:[#allocation3 + $0x4f0] sm:$0xff]  ;;  %v1349_v11 = vld [vmem:[#allocation3 + $0x528] sm:$0xff] }
 0x464   : > { %2846 = vmatprep.subr.bf16.mxu0 %v2845_v2  ;;  %v1345_v2 = vld [vmem:[#allocation3 + $0x508] sm:$0xff]  ;;  %v2871_v5 = vpack.c.bf16 %v1342_v1, %v1340_v0  ;;  %v1368_v1 = vld [vmem:[#allocation3 + $0x5c0] sm:$0xff] }
 0x465   : > { %v2873_v6 = vpack.c.bf16 %v1347_v33, %v1345_v2  ;;  %v1370_v2 = vld [vmem:[#allocation3 + $0x5d0] sm:$0xff]  ;;  %v1373_v33 = vld [vmem:[#allocation3 + $0x5e8] sm:$0xff] }
 0x467   : > { %2848 = vmatpush1.bf16.msra.mxu0 %v2847_v15  ;;  %v1351_v15 = vld [vmem:[#allocation3 + $0x538] sm:$0xff] }
 0x468   : > { %2850 = vmatprep.subr.bf16.mxu0 %v2849_v17  ;;  %v2875_v17 = vpack.c.bf16 %v1346_v10, %v1344_v34  ;;  %v2877_v18 = vpack.c.bf16 %v1351_v15, %v1349_v11  ;;  %v1372_v10 = vld [vmem:[#allocation3 + $0x5e0] sm:$0xff]  ;;  %v1374_v11 = vld [vmem:[#allocation3 + $0x5f0] sm:$0xff] }
 0x469   : > { %v1307_v15 = vld [vmem:[#allocation2] sm:$0xfc] }
 0x46b   : > { %2852 = vmatpush1.bf16.msra.mxu0 %v2851_v29  ;;  %v1355_v29 = vld [vmem:[#allocation3 + $0x558] sm:$0xff] }
 0x46c   : > { %2854 = vmatprep.subr.bf16.mxu0 %v2853_v31  ;;  %v2879_v31 = vpack.c.bf16 %v1350_v22, %v1348_v21  ;;  %v2881_v32 = vpack.c.bf16 %v1355_v29, %v1353_v27  ;;  %v1381_v21 = vrot.slane %v1307_v15, 2  ;;  %v991_v29 = vld [vmem:[%s4024_s6] sm:$0x3] }
 0x46f   : > { %2856 = vmatpush1.bf16.msra.mxu0 %v2855_v40  ;;  %v1359_v40 = vld [vmem:[#allocation3 + $0x578] sm:$0xff] }
 0x470   : > { %2858 = vmatprep.subr.bf16.mxu0 %v2857_v41  ;;  %v2883_v41 = vpack.c.bf16 %v1354_v36, %v1352_v35  ;;  %v2885_v42 = vpack.c.bf16 %v1359_v40, %v1357_v38  ;;  %v1476_v35 = vld [vmem:[%s556_s28] sm:$0x3]  ;;  %v1147_v36 = vrot.slane %v991_v29, %v3875_v43  ;;  %s4060_s28 = sld [smem:[#allocation18_spill]] }
 0x473   : > { %2860 = vmatpush1.bf16.msra.mxu0 %v2859_v49  ;;  %v1363_v49 = vld [vmem:[#allocation3 + $0x598] sm:$0xff] }
 0x474   : > { %2862 = vmatprep.subr.bf16.mxu0 %v2861_v25  ;;  %v2887_v25 = vpack.c.bf16 %v1358_v45, %v1356_v44  ;;  %v2889_v50 = vpack.c.bf16 %v1363_v49, %v1361_v47  ;;  %v1481_v44 = vrot.slane %v1476_v35, %v3853_v24  ;;  %v1485_v49 = vrot.slane %v1476_v35, %v3875_v43 }
 0x477   : > { %2864 = vmatpush1.bf16.msra.mxu0 %v2863_v52  ;;  %v1367_v52 = vld [vmem:[#allocation3 + $0x5b8] sm:$0xff] }
 0x478   : > { %2866 = vmatprep.subr.bf16.mxu0 %v2865_v53  ;;  %v2891_v53 = vpack.c.bf16 %v1362_v26, %v1360_v51  ;;  %v2893_v54 = vpack.c.bf16 %v1367_v52, %v1365_v23 }
 0x47b   : > { %2868 = vmatpush1.bf16.msra.mxu0 %v2867_v60  ;;  %v1371_v60 = vld [vmem:[#allocation3 + $0x5d8] sm:$0xff] }
 0x47c   : > { %2870 = vmatprep.subr.bf16.mxu0 %v2869_v61  ;;  %v2895_v61 = vpack.c.bf16 %v1366_v58, %v1364_v57  ;;  %v2897_v0 = vpack.c.bf16 %v1371_v60, %v1369_v59 }
 0x47f   : > { %2872 = vmatpush1.bf16.msra.mxu0 %v2871_v5  ;;  %v1375_v5 = vld [vmem:[#allocation3 + $0x5f8] sm:$0xff] }
 0x480   : > { %2874 = vmatprep.subr.bf16.mxu0 %v2873_v6  ;;  %v2899_v6 = vpack.c.bf16 %v1370_v2, %v1368_v1  ;;  %v2901_v34 = vpack.c.bf16 %v1375_v5, %v1373_v33 }
 0x483   : > { %2876 = vmatpush1.bf16.msra.mxu0 %v2875_v17  ;;  %v1309_v17 = vld [vmem:[#allocation2 + $0x10] sm:$0x3] }
 0x484   : > { %2878 = vmatprep.subr.bf16.mxu0 %v2877_v18  ;;  %v2903_v18 = vpack.c.bf16 %v1374_v11, %v1372_v10  ;;  %v1382_v22 = vrot.slane %v1309_v17, 2  ;;  %v1886_v17 = vld [vmem:[#allocation6 + $0x8] sm:$0xff] }
 0x486   : > { %v1383_v27 = vsel %vm1380_vm3, %v1381_v21, %v1382_v22 }
 0x487   : > { %2880 = vmatpush1.bf16.msra.mxu0 %v2879_v31  ;;  %v1462_v31 = vld [vmem:[%s552_s30] sm:$0x3]  ;;  %s2492_s30 = sshll.u32 %s3513_s13, 8  ;;  %s2346_s13 = scalar_lea.sflag [#allocation5], %s541_s24 }
 0x488   : > { %2882 = vmatprep.subr.bf16.mxu0 %v2881_v32  ;;  %v1143_v32 = vrot.slane %v991_v29, %v3853_v24  ;;  %v1467_v38 = vrot.slane %v1462_v31, %v3853_v24  ;;  %v1887_v29 = vld [vmem:[#allocation6 + $0x10] sm:$0xff]  ;;  %s3976_s22 = scalar_lea.hbm %s4060_s28, %s2492_s30 }
 0x48b   : > { %2884 = vmatpush1.bf16.msra.mxu0 %v2883_v41  ;;  %v1471_v41 = vrot.slane %v1462_v31, %v3875_v43 }
 0x48c   : > { %2886 = vmatprep.subr.bf16.mxu0 %v2885_v42 }
 0x48f   : > { %2888 = vmatpush1.bf16.msra.mxu0 %v2887_v25 }
 0x490   : > { %2890 = vmatprep.subr.bf16.mxu0 %v2889_v50 }
 0x493   : > { %2892 = vmatpush1.bf16.msra.mxu0 %v2891_v53 }
 0x494   : > { %2894 = vmatprep.subr.bf16.mxu0 %v2893_v54 }
 0x497   : > { %2896 = vmatpush1.bf16.msra.mxu0 %v2895_v61 }
 0x498   : > { %2898 = vmatprep.subr.bf16.mxu0 %v2897_v0 }
 0x49b   : > { %2900 = vmatpush1.bf16.msra.mxu0 %v2899_v6 }
 0x49c   : > { %2902 = vmatprep.subr.bf16.mxu0 %v2901_v34 }
 0x49f   : > { %2904 = vmatpush1.bf16.msra.mxu0 %v2903_v18  ;;  %v1888_v18 = vld [vmem:[#allocation6 + $0x18] sm:$0xff] }
 0x4a0   : > { %v2985_v21 = vpack.c.bf16 %v1888_v18, %v1886_v17  ;;  %v1921_v18 = vld [vmem:[#allocation6 + $0x120] sm:$0xff] }
 0x4a2   : > { %1454 = vmatmul.mubr.f32.vlgmr.msra.gmra.mrb[8].mxu0 %v1383_v27  ;;  %v1885_v27 = vld [vmem:[#allocation6] sm:$0xff] }
 0x4a3   : > { %v2987_v35 = vpack.c.bf16 %v1887_v29, %v1885_v27  ;;  %v1926_v27 = vld [vmem:[#allocation6 + $0x148] sm:$0xff]  ;;  %v1928_v29 = vld [vmem:[#allocation6 + $0x158] sm:$0xff] }
 0x575   : > { %v1455_v40 = vpop.f32.mrb[8].mxu0 }
 0x576   : > { %v3177_v42 = vadd.f32 %v1455_v40, %v1143_v32  ;;  %v1457_v45 = vpop.f32.mrb[9].mxu0  ;;  %v1891_v40 = vld [vmem:[#allocation6 + $0x30] sm:$0xff] }
 0x577   : > { %v3178_v47 = vadd.f32 %v1457_v45, %v1147_v36  ;;  %v1893_v45 = vld [vmem:[#allocation6 + $0x40] sm:$0xff] }
 0x578   : > { %v1474_v25 = vmul.f32 %v3177_v42, %v1467_v38  ;;  %v1896_v42 = vld [vmem:[#allocation6 + $0x58] sm:$0xff] }
 0x579   : > { %v1475_v50 = vmul.f32 %v3178_v47, %v1471_v41  ;;  %v1894_v41 = vld [vmem:[#allocation6 + $0x48] sm:$0xff]  ;;  %v1895_v47 = vld [vmem:[#allocation6 + $0x50] sm:$0xff] }
 0x57a   : > { %v1488_v51 = vadd.f32 %v1481_v44, %v1474_v25  ;;  %v2993_v44 = vpack.c.bf16 %v1896_v42, %v1894_v41  ;;  %v1898_v25 = vld [vmem:[#allocation6 + $0x68] sm:$0xff]  ;;  %v1936_v42 = vld [vmem:[#allocation6 + $0x198] sm:$0xff] }
 0x57b   : > { %v1489_v26 = vadd.f32 %v1485_v49, %v1475_v50  ;;  %v2995_v49 = vpack.c.bf16 %v1895_v47, %v1893_v45  ;;  %v1900_v50 = vld [vmem:[#allocation6 + $0x78] sm:$0xff]  ;;  %v1934_v41 = vld [vmem:[#allocation6 + $0x188] sm:$0xff]  ;;  %v1933_v45 = vld [vmem:[#allocation6 + $0x180] sm:$0xff] }
 0x57c   : > { %v1492_v23 = vrot.slane %v1488_v51, 4  ;;  %v1935_v47 = vld [vmem:[#allocation6 + $0x190] sm:$0xff] }
 0x57d   : > { %v1498_v52 = vrot.slane %v1489_v26, 4 }
 0x57e   : > { %v1493_v53 = vadd.f32 %v1492_v23, %v1488_v51  ;;  %v1899_v23 = vld [vmem:[#allocation6 + $0x70] sm:$0xff] }
 0x57f   : > { %v1499_v54 = vadd.f32 %v1498_v52, %v1489_v26 }
 0x580   : > { %v1494_v57 = vrot.slane %v1493_v53, 2 }
 0x581   : > { %v1500_v58 = vrot.slane %v1499_v54, 2 }
 0x582   : > { %v1495_v59 = vadd.f32 %v1494_v57, %v1493_v53  ;;  %v1902_v53 = vld [vmem:[#allocation6 + $0x88] sm:$0xff] }
 0x583   : > { %v1501_v60 = vadd.f32 %v1500_v58, %v1499_v54  ;;  %v1904_v54 = vld [vmem:[#allocation6 + $0x98] sm:$0xff]  ;;  %v1901_v58 = vld [vmem:[#allocation6 + $0x80] sm:$0xff] }
 0x584   : > { %v1496_v61 = vrot.slane %v1495_v59, 1  ;;  %v3001_v57 = vpack.c.bf16 %v1904_v54, %v1902_v53  ;;  %v1942_v53 = vld [vmem:[#allocation6 + $0x1c8] sm:$0xff]  ;;  %v1944_v54 = vld [vmem:[#allocation6 + $0x1d8] sm:$0xff] }
 0x585   : > { %v1502_v0 = vrot.slane %v1501_v60, 1 }
 0x586   : > { %v1497_v2 = vadd.f32 %v1496_v61, %v1495_v59  ;;  %v1903_v59 = vld [vmem:[#allocation6 + $0x90] sm:$0xff]  ;;  %v1906_v61 = vld [vmem:[#allocation6 + $0xa8] sm:$0xff] }
 0x587   : > { %v1503_v1 = vadd.f32 %v1502_v0, %v1501_v60  ;;  %v3003_v60 = vpack.c.bf16 %v1903_v59, %v1901_v58  ;;  %v1908_v0 = vld [vmem:[#allocation6 + $0xb8] sm:$0xff]  ;;  %v3041_v58 = vpack.c.bf16 %v1944_v54, %v1942_v53  ;;  %v1943_v59 = vld [vmem:[#allocation6 + $0x1d0] sm:$0xff] }
 0x588   : > { %v2049_v53 = vld [vmem:[#allocation6 + $0x258] sm:$0xff] }
 0x589   : > { %1568 = vmatprep.mubr.f32.mxu1 %v1503_v1  ;;  %v3005_v1 = vpack.c.bf16 %v1908_v0, %v1906_v61  ;;  %v1948_v61 = vld [vmem:[#allocation6 + $0x1f8] sm:$0xff] }
 0x58a   : > { %1569 = vmatmul.mubr.f32.vlgmr.msra.gmra.mrb[0].mxu1 %v1497_v2  ;;  %v1905_v2 = vld [vmem:[#allocation6 + $0xa0] sm:$0xff] }
 0x58b   : > { %2940 = vmatpush1.bf16.msra.mxu1 %v3805_v4  ;;  %1642 = vmatprep.mubr.f32.mxu1 %v3410_v16 }
 0x58c   : > { %2942 = vmatprep.subr.bf16.mxu1 %v3817_v9 }
 0x58f   : > { %2944 = vmatpush1.bf16.msra.mxu1 %v3825_v12 }
 0x590   : > { %2946 = vmatprep.subr.bf16.mxu1 %v3625_v3 }
 0x65d   : > { %v2595_v33 = vpop.f32.mrb[0].mxu1 }
 0x65e   : > { %v2596_v5 = vpop.f32.mrb[1].mxu1 }
 0x65f   : > { %v2597_v6 = vadd.f32 %v2596_v5, %v2595_v33  ;;  %v1907_v33 = vld [vmem:[#allocation6 + $0xb0] sm:$0xff] }
 0x660   : > { %v3007_v5 = vpack.c.bf16 %v1907_v33, %v1905_v2  ;;  %v1945_v2 = vld [vmem:[#allocation6 + $0x1e0] sm:$0xff]  ;;  %v1947_v33 = vld [vmem:[#allocation6 + $0x1f0] sm:$0xff] }
 0x661   : > { %v1574_v34 = vmul.f32 0.015625, %v2597_v6  ;;  %v1910_v6 = vld [vmem:[#allocation6 + $0xc8] sm:$0xff] }
 0x663   : > { %2482 = vmatmul.mubr.msk.f32.vlgmr.msra.gmra.mrb[2].mxu1 %vm693_vm1, %v1574_v34  ;;  %v1912_v34 = vld [vmem:[#allocation6 + $0xd8] sm:$0xff] }
 0x664   : > { %2948 = vmatpush3.bf16.msra.mxu1 %v3636_v7 }
 0x665   : > { %2950 = vmatprep.subr.bf16.mxu1 %v3638_v8 }
 0x668   : > { %2952 = vmatpush3.bf16.msra.mxu1 %v3655_v13 }
 0x669   : > { %2954 = vmatprep.subr.bf16.mxu1 %v3660_v14 }
 0x66c   : > { %2956 = vmatpush3.bf16.msra.mxu1 %v3681_v19 }
 0x66d   : > { %2958 = vmatprep.subr.bf16.mxu1 %v3685_v20 }
 0x670   : > { %2960 = vmatpush3.bf16.msra.mxu1 %v3708_v28 }
 0x671   : > { %2962 = vmatprep.subr.bf16.mxu1 %v3713_v30 }
 0x674   : > { %2964 = vmatpush3.bf16.msra.mxu1 %v3731_v37 }
 0x675   : > { %2966 = vmatprep.subr.bf16.mxu1 %v3735_v39 }
 0x678   : > { %2968 = vmatpush3.bf16.msra.mxu1 %v3751_v46 }
 0x679   : > { %2970 = vmatprep.subr.bf16.mxu1 %v3755_v48 }
 0x67c   : > { %2972 = vmatpush3.bf16.msra.mxu1 %v3771_v55 }
 0x67d   : > { %2974 = vmatprep.subr.bf16.mxu1 %v3774_v56 }
 0x680   : > { %2976 = vmatpush3.bf16.msra.mxu1 %v3791_v62 }
 0x681   : > { %2978 = vmatprep.subr.bf16.mxu1 %v3794_v63 }
 0x736   : > { %v1644_v3 = vpop.f32.mrb[2].mxu1 }
 0x737   : > { %v1652_v7 = vrot.slane %v1644_v3, %v3853_v24  ;;  %v1646_v8 = vpop.f32.mrb[3].mxu1  ;;  %v3009_v3 = vpack.c.bf16 %v1912_v34, %v1910_v6  ;;  %v2039_v6 = vld [vmem:[#allocation6 + $0x208] sm:$0xff]  ;;  %v2041_v34 = vld [vmem:[#allocation6 + $0x218] sm:$0xff] }
 0x738   : > { %v1656_v13 = vrot.slane %v1646_v8, %v3853_v24  ;;  %v1911_v8 = vld [vmem:[#allocation6 + $0xd0] sm:$0xff] }
 0x739   : > { %v3933_v14 = vsub.f32 %v1488_v51, %v1652_v7  ;;  %v2997_v51 = vpack.c.bf16 %v1900_v50, %v1898_v25  ;;  %v1909_v7 = vld [vmem:[#allocation6 + $0xc0] sm:$0xff]  ;;  %v1938_v25 = vld [vmem:[#allocation6 + $0x1a8] sm:$0xff]  ;;  %v1940_v50 = vld [vmem:[#allocation6 + $0x1b8] sm:$0xff] }
 0x73a   : > { %v3935_v19 = vsub.f32 %v1489_v26, %v1656_v13  ;;  %v1897_v26 = vld [vmem:[#allocation6 + $0x60] sm:$0xff]  ;;  %v3011_v13 = vpack.c.bf16 %v1911_v8, %v1909_v7 }
 0x73b   : > { %v1659_v20 = vmul.f32 %v3933_v14, %v3933_v14  ;;  %v2999_v52 = vpack.c.bf16 %v1899_v23, %v1897_v26  ;;  %v1937_v26 = vld [vmem:[#allocation6 + $0x1a0] sm:$0xff]  ;;  %v1939_v23 = vld [vmem:[#allocation6 + $0x1b0] sm:$0xff] }
 0x73c   : > { %v1660_v28 = vmul.f32 %v3935_v19, %v3935_v19 }
 0x73d   : > { %v1661_v30 = vrot.slane %v1659_v20, 4 }
 0x73e   : > { %v1667_v37 = vrot.slane %v1660_v28, 4 }
 0x73f   : > { %v1662_v39 = vadd.f32 %v1661_v30, %v1659_v20  ;;  %v1914_v20 = vld [vmem:[#allocation6 + $0xe8] sm:$0xff] }
 0x740   : > { %v1668_v46 = vadd.f32 %v1667_v37, %v1660_v28  ;;  %v1916_v28 = vld [vmem:[#allocation6 + $0xf8] sm:$0xff]  ;;  %v1913_v37 = vld [vmem:[#allocation6 + $0xe0] sm:$0xff] }
 0x741   : > { %v1663_v48 = vrot.slane %v1662_v39, 2  ;;  %v3013_v30 = vpack.c.bf16 %v1916_v28, %v1914_v20 }
 0x742   : > { %v1669_v55 = vrot.slane %v1668_v46, 2 }
 0x743   : > { %v1664_v56 = vadd.f32 %v1663_v48, %v1662_v39  ;;  %v1915_v39 = vld [vmem:[#allocation6 + $0xf0] sm:$0xff]  ;;  %v1918_v48 = vld [vmem:[#allocation6 + $0x108] sm:$0xff] }
 0x744   : > { %v1670_v62 = vadd.f32 %v1669_v55, %v1668_v46  ;;  %v3015_v46 = vpack.c.bf16 %v1915_v39, %v1913_v37  ;;  %v1920_v55 = vld [vmem:[#allocation6 + $0x118] sm:$0xff]  ;;  %v1490_v37 = vld [vmem:[%s4025_s7] sm:$0x3] }
 0x745   : > { %v1665_v63 = vrot.slane %v1664_v56, 1  ;;  %v1491_v39 = vld [vmem:[%s4026_s8] sm:$0x3] }
 0x746   : > { %v1671_v10 = vrot.slane %v1670_v62, 1 }
 0x747   : > { %v1666_v15 = vadd.f32 %v1665_v63, %v1664_v56  ;;  %v3017_v56 = vpack.c.bf16 %v1920_v55, %v1918_v48  ;;  %v1919_v63 = vld [vmem:[#allocation6 + $0x110] sm:$0xff]  ;;  %v1840_v55 = vrot.slane %v1490_v37, %v3875_v43 }
 0x748   : > { %v1672_v11 = vadd.f32 %v1671_v10, %v1670_v62  ;;  %v1917_v62 = vld [vmem:[#allocation6 + $0x100] sm:$0xff] }
 0x749   : > { %v3019_v10 = vpack.c.bf16 %v1919_v63, %v1917_v62  ;;  %v1849_v63 = vrot.slane %v1491_v39, %v3853_v24 }
 0x74a   : > { %1737 = vmatprep.mubr.f32.mxu1 %v1672_v11  ;;  %v1922_v11 = vld [vmem:[#allocation6 + $0x128] sm:$0xff] }
 0x74b   : > { %1738 = vmatmul.mubr.f32.vlgmr.msra.gmra.mrb[4].mxu1 %v1666_v15  ;;  %v1924_v15 = vld [vmem:[#allocation6 + $0x138] sm:$0xff] }
 0x74c   : > { %2980 = vmatpush1.bf16.msra.mxu1 %v3805_v4  ;;  %1811 = vmatprep.mubr.f32.mxu1 %v3410_v16  ;;  %v1890_v4 = vld [vmem:[#allocation6 + $0x28] sm:$0xff]  ;;  %v1892_v16 = vld [vmem:[#allocation6 + $0x38] sm:$0xff]  ;;  %v3021_v17 = vpack.c.bf16 %v1924_v15, %v1922_v11  ;;  %v1853_v11 = vrot.slane %v1491_v39, %v3875_v43  ;;  %v2058_v39 = vld [vmem:[#allocation6 + $0x2a0] sm:$0xff] }
 0x74d   : > { %2982 = vmatprep.subr.bf16.mxu1 %v3817_v9  ;;  %v2989_v38 = vpack.c.bf16 %v1892_v16, %v1890_v4  ;;  %v1889_v9 = vld [vmem:[#allocation6 + $0x20] sm:$0xff]  ;;  %v1930_v4 = vld [vmem:[#allocation6 + $0x168] sm:$0xff]  ;;  %v1932_v16 = vld [vmem:[#allocation6 + $0x178] sm:$0xff] }
 0x750   : > { %2984 = vmatpush1.bf16.msra.mxu1 %v3825_v12  ;;  %v2991_v12 = vpack.c.bf16 %v1891_v40, %v1889_v9  ;;  %v1929_v9 = vld [vmem:[#allocation6 + $0x160] sm:$0xff]  ;;  %v1931_v40 = vld [vmem:[#allocation6 + $0x170] sm:$0xff] }
 0x751   : > { %2986 = vmatprep.subr.bf16.mxu1 %v2985_v21  ;;  %v1923_v21 = vld [vmem:[#allocation6 + $0x130] sm:$0xff] }
 0x81e   : > { %v2630_v22 = vpop.f32.mrb[4].mxu1 }
 0x81f   : > { %v2631_v31 = vpop.f32.mrb[5].mxu1 }
 0x820   : > { %v2632_v32 = vadd.f32 %v2631_v31, %v2630_v22  ;;  %v3023_v22 = vpack.c.bf16 %v1923_v21, %v1921_v18  ;;  %v3025_v31 = vpack.c.bf16 %v1928_v29, %v1926_v27 }
 0x822   : > { %v1743_v36 = vmul.f32 0.015625, %v2632_v32  ;;  %v1925_v32 = vld [vmem:[#allocation6 + $0x140] sm:$0xff] }
 0x824   : > { %2483 = vmatmul.mubr.msk.f32.vlgmr.msra.gmra.mrb[6].mxu1 %vm693_vm1, %v1743_v36 }
 0x825   : > { %2988 = vmatpush1.bf16.msra.mxu1 %v2987_v35  ;;  %v1927_v35 = vld [vmem:[#allocation6 + $0x150] sm:$0xff] }
 0x826   : > { %2990 = vmatprep.subr.bf16.mxu1 %v2989_v38  ;;  %v3027_v36 = vpack.c.bf16 %v1927_v35, %v1925_v32  ;;  %v3029_v38 = vpack.c.bf16 %v1932_v16, %v1930_v4 }
 0x829   : > { %2992 = vmatpush1.bf16.msra.mxu1 %v2991_v12  ;;  %v3031_v12 = vpack.c.bf16 %v1931_v40, %v1929_v9  ;;  %v2038_v9 = vld [vmem:[#allocation6 + $0x200] sm:$0xff]  ;;  %v2040_v40 = vld [vmem:[#allocation6 + $0x210] sm:$0xff] }
 0x82a   : > { %2994 = vmatprep.subr.bf16.mxu1 %v2993_v44  ;;  %v3033_v44 = vpack.c.bf16 %v1936_v42, %v1934_v41  ;;  %v2045_v41 = vld [vmem:[#allocation6 + $0x238] sm:$0xff]  ;;  %v3051_v42 = vpack.c.bf16 %v2040_v40, %v2038_v9  ;;  %v2076_v9 = vld [vmem:[#allocation6 + $0x330] sm:$0xff]  ;;  %v2079_v40 = vld [vmem:[#allocation6 + $0x348] sm:$0xff] }
 0x82d   : > { %2996 = vmatpush1.bf16.msra.mxu1 %v2995_v49  ;;  %v3035_v49 = vpack.c.bf16 %v1935_v47, %v1933_v45  ;;  %v2044_v45 = vld [vmem:[#allocation6 + $0x230] sm:$0xff] }
 0x82e   : > { %2998 = vmatprep.subr.bf16.mxu1 %v2997_v51  ;;  %v3037_v51 = vpack.c.bf16 %v1940_v50, %v1938_v25 }
 0x831   : > { %3000 = vmatpush1.bf16.msra.mxu1 %v2999_v52  ;;  %v3039_v52 = vpack.c.bf16 %v1939_v23, %v1937_v26 }
 0x832   : > { %3002 = vmatprep.subr.bf16.mxu1 %v3001_v57  ;;  %v1941_v57 = vld [vmem:[#allocation6 + $0x1c0] sm:$0xff] }
 0x833   : > { %v3043_v0 = vpack.c.bf16 %v1943_v59, %v1941_v57  ;;  %v2046_v59 = vld [vmem:[#allocation6 + $0x240] sm:$0xff] }
 0x835   : > { %3004 = vmatpush1.bf16.msra.mxu1 %v3003_v60  ;;  %v1946_v60 = vld [vmem:[#allocation6 + $0x1e8] sm:$0xff] }
 0x836   : > { %3006 = vmatprep.subr.bf16.mxu1 %v3005_v1  ;;  %v3045_v1 = vpack.c.bf16 %v1948_v61, %v1946_v60  ;;  %v2048_v60 = vld [vmem:[#allocation6 + $0x250] sm:$0xff]  ;;  %v2051_v61 = vld [vmem:[#allocation6 + $0x268] sm:$0xff] }
 0x839   : > { %3008 = vmatpush1.bf16.msra.mxu1 %v3007_v5  ;;  %v3047_v5 = vpack.c.bf16 %v1947_v33, %v1945_v2  ;;  %v2050_v33 = vld [vmem:[#allocation6 + $0x260] sm:$0xff] }
 0x83a   : > { %3010 = vmatprep.subr.bf16.mxu1 %v3009_v3  ;;  %v3049_v3 = vpack.c.bf16 %v2041_v34, %v2039_v6  ;;  %v2055_v6 = vld [vmem:[#allocation6 + $0x288] sm:$0xff]  ;;  %v2057_v34 = vld [vmem:[#allocation6 + $0x298] sm:$0xff] }
 0x83d   : > { %3012 = vmatpush1.bf16.msra.mxu1 %v3011_v13 }
 0x83e   : > { %3014 = vmatprep.subr.bf16.mxu1 %v3013_v30 }
 0x841   : > { %3016 = vmatpush1.bf16.msra.mxu1 %v3015_v46  ;;  %v1836_v46 = vrot.slane %v1490_v37, %v3853_v24 }
 0x842   : > { %3018 = vmatprep.subr.bf16.mxu1 %v3017_v56 }
 0x845   : > { %3020 = vmatpush1.bf16.msra.mxu1 %v3019_v10 }
 0x846   : > { %3022 = vmatprep.subr.bf16.mxu1 %v3021_v17 }
 0x849   : > { %3024 = vmatpush1.bf16.msra.mxu1 %v3023_v22 }
 0x84a   : > { %3026 = vmatprep.subr.bf16.mxu1 %v3025_v31 }
 0x84d   : > { %3028 = vmatpush1.bf16.msra.mxu1 %v3027_v36 }
 0x84e   : > { %3030 = vmatprep.subr.bf16.mxu1 %v3029_v38 }
 0x851   : > { %3032 = vmatpush1.bf16.msra.mxu1 %v3031_v12  ;;  %v2043_v12 = vld [vmem:[#allocation6 + $0x228] sm:$0xff] }
 0x852   : > { %3034 = vmatprep.subr.bf16.mxu1 %v3033_v44  ;;  %v2042_v44 = vld [vmem:[#allocation6 + $0x220] sm:$0xff]  ;;  %v3053_v50 = vpack.c.bf16 %v2045_v41, %v2043_v12  ;;  %v2081_v12 = vld [vmem:[#allocation6 + $0x358] sm:$0xff] }
 0x853   : > { %v3055_v57 = vpack.c.bf16 %v2044_v45, %v2042_v44  ;;  %v2078_v44 = vld [vmem:[#allocation6 + $0x340] sm:$0xff]  ;;  %v2080_v45 = vld [vmem:[#allocation6 + $0x350] sm:$0xff] }
 0x855   : > { %3036 = vmatpush1.bf16.msra.mxu1 %v3035_v49 }
 0x856   : > { %3038 = vmatprep.subr.bf16.mxu1 %v3037_v51 }
 0x859   : > { %3040 = vmatpush1.bf16.msra.mxu1 %v3039_v52  ;;  %v2047_v52 = vld [vmem:[#allocation6 + $0x248] sm:$0xff] }
 0x85a   : > { %3042 = vmatprep.subr.bf16.mxu1 %v3041_v58  ;;  %v3057_v58 = vpack.c.bf16 %v2049_v53, %v2047_v52  ;;  %v2089_v52 = vld [vmem:[#allocation6 + $0x398] sm:$0xff] }
 0x85d   : > { %3044 = vmatpush1.bf16.msra.mxu1 %v3043_v0  ;;  %v2053_v0 = vld [vmem:[#allocation6 + $0x278] sm:$0xff] }
 0x85e   : > { %3046 = vmatprep.subr.bf16.mxu1 %v3045_v1  ;;  %v3059_v1 = vpack.c.bf16 %v2048_v60, %v2046_v59  ;;  %v3061_v2 = vpack.c.bf16 %v2053_v0, %v2051_v61  ;;  %v2091_v59 = vld [vmem:[#allocation6 + $0x3a8] sm:$0xff]  ;;  %v2093_v60 = vld [vmem:[#allocation6 + $0x3b8] sm:$0xff] }
 0x85f   : > { %v3101_v0 = vpack.c.bf16 %v2093_v60, %v2091_v59  ;;  %v2212_v59 = vld [vmem:[#allocation6 + $0x4a0] sm:$0xff]  ;;  %v2214_v60 = vld [vmem:[#allocation6 + $0x4b0] sm:$0xff] }
 0x861   : > { %3048 = vmatpush1.bf16.msra.mxu1 %v3047_v5  ;;  %v2052_v5 = vld [vmem:[#allocation6 + $0x270] sm:$0xff] }
 0x862   : > { %3050 = vmatprep.subr.bf16.mxu1 %v3049_v3  ;;  %v3063_v3 = vpack.c.bf16 %v2052_v5, %v2050_v33  ;;  %v2095_v33 = vld [vmem:[#allocation6 + $0x3c8] sm:$0xff]  ;;  %v2097_v5 = vld [vmem:[#allocation6 + $0x3d8] sm:$0xff] }
 0x8f7   : > { %v1813_v7 = vpop.f32.mrb[6].mxu1 }
 0x8f8   : > { %v1821_v8 = vrot.slane %v1813_v7, %v3853_v24  ;;  %v1815_v13 = vpop.f32.mrb[7].mxu1  ;;  %v3065_v7 = vpack.c.bf16 %v2057_v34, %v2055_v6  ;;  %v3105_v34 = vpack.c.bf16 %v2097_v5, %v2095_v33  ;;  %v2216_v33 = vld [vmem:[#allocation6 + $0x4c0] sm:$0xff]  ;;  %v2218_v5 = vld [vmem:[#allocation6 + $0x4d0] sm:$0xff] }
 0x8f9   : > { %v1825_v20 = vrot.slane %v1815_v13, %v3853_v24  ;;  %v2056_v13 = vld [vmem:[#allocation6 + $0x290] sm:$0xff] }
 0x8fa   : > { %v1826_v28 = vadd.f32 1e-05, %v1821_v8  ;;  %v2054_v8 = vld [vmem:[#allocation6 + $0x280] sm:$0xff] }
 0x8fb   : > { %v1827_v30 = vadd.f32 1e-05, %v1825_v20  ;;  %v2059_v20 = vld [vmem:[#allocation6 + $0x2a8] sm:$0xff] }
 0x8fc   : > { %3264 = vrsqrt.f32 %v1826_v28  ;;  %v2061_v28 = vld [vmem:[#allocation6 + $0x2b8] sm:$0xff] }
 0x8fd   : > { %3266 = vrsqrt.f32 %v1827_v30  ;;  %v3067_v30 = vpack.c.bf16 %v2056_v13, %v2054_v8  ;;  %v3069_v37 = vpack.c.bf16 %v2061_v28, %v2059_v20  ;;  %v2099_v8 = vld [vmem:[#allocation6 + $0x3e8] sm:$0xff]  ;;  %v2101_v13 = vld [vmem:[#allocation6 + $0x3f8] sm:$0xff] }
 0x8fe   : > { %v3109_v28 = vpack.c.bf16 %v2101_v13, %v2099_v8  ;;  %v2220_v8 = vld [vmem:[#allocation6 + $0x4e0] sm:$0xff]  ;;  %v2222_v13 = vld [vmem:[#allocation6 + $0x4f0] sm:$0xff] }
 0x906   : > { %v3265_v48 = vpop.eup %3264 }
 0x907   : > { %v3267_v56 = vpop.eup %3266  ;;  %v1830_v62 = vmul.f32 %v3265_v48, %v3933_v14  ;;  %v2063_v48 = vld [vmem:[#allocation6 + $0x2c8] sm:$0xff] }
 0x908   : > { %v1831_v10 = vmul.f32 %v3267_v56, %v3935_v19 }
 0x909   : > { %v1843_v15 = vmul.f32 %v1836_v46, %v1830_v62  ;;  %v2060_v46 = vld [vmem:[#allocation6 + $0x2b0] sm:$0xff] }
 0x90a   : > { %v1844_v17 = vmul.f32 %v1840_v55, %v1831_v10  ;;  %v2065_v55 = vld [vmem:[#allocation6 + $0x2d8] sm:$0xff]  ;;  %v3071_v56 = vpack.c.bf16 %v2060_v46, %v2058_v39  ;;  %v2064_v10 = vld [vmem:[#allocation6 + $0x2d0] sm:$0xff]  ;;  %v2193_v39 = vld [vmem:[#allocation6 + $0x408] sm:$0xff] }
 0x90b   : > { %v1856_v18 = vadd.f32 %v1849_v63, %v1843_v15  ;;  %v3073_v62 = vpack.c.bf16 %v2065_v55, %v2063_v48  ;;  %v2062_v63 = vld [vmem:[#allocation6 + $0x2c0] sm:$0xff]  ;;  %v2069_v15 = vld [vmem:[#allocation6 + $0x2f8] sm:$0xff] }
 0x90c   : > { %v1857_v21 = vadd.f32 %v1853_v11, %v1844_v17  ;;  %v2067_v11 = vld [vmem:[#allocation6 + $0x2e8] sm:$0xff]  ;;  %v3075_v17 = vpack.c.bf16 %v2064_v10, %v2062_v63  ;;  %v2195_v46 = vld [vmem:[#allocation6 + $0x418] sm:$0xff] }
 0x90d   : > { %v2484_v22 = vmul.f32 -1.442695, %v1856_v18  ;;  %v3113_v10 = vpack.c.bf16 %v2195_v46, %v2193_v39  ;;  %v2224_v39 = vld [vmem:[#allocation6 + $0x500] sm:$0xff]  ;;  %v2226_v46 = vld [vmem:[#allocation6 + $0x510] sm:$0xff] }
 0x90e   : > { %v2485_v27 = vmul.f32 -1.442695, %v1857_v21 }
 0x90f   : > { %3268 = vpow2.f32 %v2484_v22  ;;  %v2068_v22 = vld [vmem:[#allocation6 + $0x2f0] sm:$0xff] }
 0x910   : > { %3270 = vpow2.f32 %v2485_v27  ;;  %v2071_v27 = vld [vmem:[#allocation6 + $0x308] sm:$0xff] }
 0x919   : > { %v3269_v29 = vpop.eup %3268 }
 0x91a   : > { %v3271_v31 = vpop.eup %3270  ;;  %v1864_v32 = vadd.f32 1.0, %v3269_v29  ;;  %v2073_v29 = vld [vmem:[#allocation6 + $0x318] sm:$0xff] }
 0x91b   : > { %v1865_v35 = vadd.f32 1.0, %v3271_v31 }
 0x91c   : > { %3272 = vrcp.f32 %v1864_v32  ;;  %v3081_v32 = vpack.c.bf16 %v2073_v29, %v2071_v27 }
 0x91d   : > { %3274 = vrcp.f32 %v1865_v35  ;;  %v2070_v35 = vld [vmem:[#allocation6 + $0x300] sm:$0xff] }
 0x926   : > { %v3273_v14 = vpop.eup %3272 }
 0x927   : > { %v3275_v36 = vpop.eup %3274  ;;  %v1870_v4 = vmul.f32 %v3273_v14, %v1856_v18  ;;  %v3077_v18 = vpack.c.bf16 %v2069_v15, %v2067_v11  ;;  %v2072_v14 = vld [vmem:[#allocation6 + $0x310] sm:$0xff]  ;;  %v2192_v11 = vld [vmem:[#allocation6 + $0x400] sm:$0xff] }
 0x928   : > { %v1871_v19 = vmul.f32 %v3275_v36, %v1857_v21  ;;  %v2066_v21 = vld [vmem:[#allocation6 + $0x2e0] sm:$0xff]  ;;  %v2075_v36 = vld [vmem:[#allocation6 + $0x328] sm:$0xff]  ;;  %v2194_v15 = vld [vmem:[#allocation6 + $0x410] sm:$0xff] }
 0x929   : > { %v1875_v16 = vrot.slane %v1870_v4, 7  ;;  %v3079_v31 = vpack.c.bf16 %v2068_v22, %v2066_v21  ;;  %v2077_v4 = vld [vmem:[#allocation6 + $0x338] sm:$0xff]  ;;  %v2197_v21 = vld [vmem:[#allocation6 + $0x428] sm:$0xff] }
 0x92a   : > { %v1876_v38 = vrot.slane %v1871_v19, 7  ;;  %v3083_v19 = vpack.c.bf16 %v2072_v14, %v2070_v35  ;;  %v2199_v22 = vld [vmem:[#allocation6 + $0x438] sm:$0xff]  ;;  %v2196_v35 = vld [vmem:[#allocation6 + $0x420] sm:$0xff]  ;;  %v2198_v14 = vld [vmem:[#allocation6 + $0x430] sm:$0xff] }
 0x92b   : > { %1881 = vst [vmem:[#allocation2 + $0x10] sm:$0x1] %v1875_v16  ;;  %1879 = vst [vmem:[#allocation2] sm:$0xfe] %v1875_v16  ;;  %v3085_v16 = vpack.c.bf16 %v2077_v4, %v2075_v36  ;;  %v2201_v4 = vld [vmem:[#allocation6 + $0x448] sm:$0xff] }
 0x92c   : > { %1882 = vst [vmem:[#allocation2 + $0x18] sm:$0x1] %v1876_v38  ;;  %1880 = vst [vmem:[#allocation2 + $0x8] sm:$0xfe] %v1876_v38  ;;  %v2074_v38 = vld [vmem:[#allocation6 + $0x320] sm:$0xff] }
 0x92d   : > { %v3087_v41 = vpack.c.bf16 %v2076_v9, %v2074_v38  ;;  %v3119_v38 = vpack.c.bf16 %v2198_v14, %v2196_v35  ;;  %v2236_v35 = vld [vmem:[#allocation6 + $0x560] sm:$0xff]  ;;  %v2238_v14 = vld [vmem:[#allocation6 + $0x570] sm:$0xff] }
 0x932   : > { %v1883_v51 = vld [vmem:[#allocation2] sm:$0xff]  ;;  %v2035_v55 = vld [vmem:[#allocation2 + $0x10] sm:$0x1] }
 0x933   : > { %v1884_v47 = vld [vmem:[#allocation2 + $0x8] sm:$0xff]  ;;  %v2036_v25 = vld [vmem:[#allocation2 + $0x18] sm:$0x1]  ;;  %v2033_v48 = vld [vmem:[#allocation2] sm:$0xfe] }
 0x934   : > { %v2034_v49 = vld [vmem:[#allocation2 + $0x8] sm:$0xfe]  ;;  %2013 = vmatprep.mubr.f32.mxu1 %v1884_v47  ;;  %v2110_v23 = vrot.slane %v2036_v25, 1  ;;  %v3091_v25 = vpack.c.bf16 %v2080_v45, %v2078_v44  ;;  %v2190_v63 = vld [vmem:[#allocation2 + $0x18] sm:$0x3] }
 0x935   : > { %v2109_v26 = vrot.slane %v2034_v49, 1  ;;  %2014 = vmatmul.mubr.f32.vlgmr.msra.gmra.mrb[8].mxu1 %v1883_v51  ;;  %v2083_v47 = vld [vmem:[#allocation6 + $0x368] sm:$0xff]  ;;  %v2085_v49 = vld [vmem:[#allocation6 + $0x378] sm:$0xff]  ;;  %v2082_v51 = vld [vmem:[#allocation6 + $0x360] sm:$0xff]  ;;  %v2264_v29 = vrot.slane %v2190_v63, 2 }
 0x936   : > { %3052 = vmatpush1.bf16.msra.mxu1 %v3051_v42  ;;  %v3089_v42 = vpack.c.bf16 %v2081_v12, %v2079_v40  ;;  %v2200_v40 = vld [vmem:[#allocation6 + $0x440] sm:$0xff]  ;;  %v2202_v12 = vld [vmem:[#allocation6 + $0x450] sm:$0xff] }
 0x937   : > { %v2111_v54 = vsel %vm1225_vm2, %v2109_v26, %v2110_v23  ;;  %3054 = vmatprep.subr.bf16.mxu1 %v3053_v50  ;;  %v3093_v50 = vpack.c.bf16 %v2085_v49, %v2083_v47  ;;  %v2084_v26 = vld [vmem:[#allocation6 + $0x370] sm:$0xff]  ;;  %v2087_v23 = vld [vmem:[#allocation6 + $0x388] sm:$0xff]  ;;  %v3123_v44 = vpack.c.bf16 %v2202_v12, %v2200_v40  ;;  %v2204_v47 = vld [vmem:[#allocation6 + $0x460] sm:$0xff] }
 0x938   : > { %2178 = vmatprep.mubr.f32.mxu1 %v2111_v54  ;;  %v3095_v53 = vpack.c.bf16 %v2084_v26, %v2082_v51  ;;  %v3097_v54 = vpack.c.bf16 %v2089_v52, %v2087_v23  ;;  %v2206_v49 = vld [vmem:[#allocation6 + $0x470] sm:$0xff]  ;;  %v2208_v23 = vld [vmem:[#allocation6 + $0x480] sm:$0xff]  ;;  %v2245_v40 = vld [vmem:[#allocation6 + $0x5a8] sm:$0xff] }
 0x939   : > { %v3127_v51 = vpack.c.bf16 %v2206_v49, %v2204_v47  ;;  %v2210_v52 = vld [vmem:[#allocation6 + $0x490] sm:$0xff]  ;;  %v2228_v63 = vld [vmem:[#allocation6 + $0x520] sm:$0xff]  ;;  %v2247_v12 = vld [vmem:[#allocation6 + $0x5b8] sm:$0xff] }
 0x93a   : > { %3056 = vmatpush1.bf16.msra.mxu1 %v3055_v57  ;;  %v2086_v57 = vld [vmem:[#allocation6 + $0x380] sm:$0xff]  ;;  %v2249_v47 = vld [vmem:[#allocation6 + $0x5c8] sm:$0xff]  ;;  %v2251_v49 = vld [vmem:[#allocation6 + $0x5d8] sm:$0xff] }
 0x93b   : > { %3058 = vmatprep.subr.bf16.mxu1 %v3057_v58  ;;  %v2088_v58 = vld [vmem:[#allocation6 + $0x390] sm:$0xff] }
 0x93c   : > { %v3099_v61 = vpack.c.bf16 %v2088_v58, %v2086_v57  ;;  %v3131_v57 = vpack.c.bf16 %v2210_v52, %v2208_v23  ;;  %v2253_v23 = vld [vmem:[#allocation6 + $0x5e8] sm:$0xff]  ;;  %v2255_v52 = vld [vmem:[#allocation6 + $0x5f8] sm:$0xff] }
 0x93e   : > { %3060 = vmatpush1.bf16.msra.mxu1 %v3059_v1  ;;  %v2090_v1 = vld [vmem:[#allocation6 + $0x3a0] sm:$0xff] }
 0x93f   : > { %3062 = vmatprep.subr.bf16.mxu1 %v3061_v2  ;;  %v2092_v2 = vld [vmem:[#allocation6 + $0x3b0] sm:$0xff] }
 0x940   : > { %v3103_v6 = vpack.c.bf16 %v2092_v2, %v2090_v1  ;;  %v3135_v1 = vpack.c.bf16 %v2214_v60, %v2212_v59  ;;  %v2187_v59 = vld [vmem:[#allocation2] sm:$0xfc]  ;;  %v2189_v60 = vld [vmem:[#allocation2 + $0x10] sm:$0x3] }
 0x942   : > { %3064 = vmatpush1.bf16.msra.mxu1 %v3063_v3  ;;  %v2094_v3 = vld [vmem:[#allocation6 + $0x3c0] sm:$0xff] }
 0x943   : > { %3066 = vmatprep.subr.bf16.mxu1 %v3065_v7  ;;  %v2096_v7 = vld [vmem:[#allocation6 + $0x3d0] sm:$0xff] }
 0x944   : > { %v3107_v20 = vpack.c.bf16 %v2096_v7, %v2094_v3  ;;  %v3139_v3 = vpack.c.bf16 %v2218_v5, %v2216_v33  ;;  %v1872_v33 = vld [vmem:[%s4028_s10] sm:$0x3] }
 0x945   : > { %v2024_v5 = vrot.slane %v1872_v33, %v3853_v24 }
 0x946   : > { %3068 = vmatpush1.bf16.msra.mxu1 %v3067_v30  ;;  %v2098_v30 = vld [vmem:[#allocation6 + $0x3e0] sm:$0xff] }
 0x947   : > { %3070 = vmatprep.subr.bf16.mxu1 %v3069_v37  ;;  %v2100_v37 = vld [vmem:[#allocation6 + $0x3f0] sm:$0xff] }
 0x94a   : > { %3072 = vmatpush1.bf16.msra.mxu1 %v3071_v56  ;;  %v3111_v56 = vpack.c.bf16 %v2100_v37, %v2098_v30  ;;  %v3143_v30 = vpack.c.bf16 %v2222_v13, %v2220_v8  ;;  %v3276_v13 = vld [vmem:[%s3678_s14] sm:$0xff] }
 0x94b   : > { %3074 = vmatprep.subr.bf16.mxu1 %v3073_v62  ;;  %v2188_v62 = vld [vmem:[#allocation2 + $0x8] sm:$0xfc] }
 0x94c   : > { %v2263_v27 = vrot.slane %v2188_v62, 2 }
 0x94e   : > { %3076 = vmatpush1.bf16.msra.mxu1 %v3075_v17  ;;  %v2106_v17 = vrot.slane %v2033_v48, 1  ;;  %v2229_v48 = vld [vmem:[#allocation6 + $0x528] sm:$0xff] }
 0x94f   : > { %3078 = vmatprep.subr.bf16.mxu1 %v3077_v18  ;;  %v2107_v18 = vrot.slane %v2035_v55, 1  ;;  %v2231_v55 = vld [vmem:[#allocation6 + $0x538] sm:$0xff] }
 0x950   : > { %v3149_v62 = vpack.c.bf16 %v2231_v55, %v2229_v48 }
 0x951   : > { %v2108_v36 = vsel %vm1225_vm2, %v2106_v17, %v2107_v18 }
 0x952   : > { %3080 = vmatpush1.bf16.msra.mxu1 %v3079_v31  ;;  %v3115_v31 = vpack.c.bf16 %v2194_v15, %v2192_v11  ;;  %v2233_v11 = vld [vmem:[#allocation6 + $0x548] sm:$0xff]  ;;  %v2235_v15 = vld [vmem:[#allocation6 + $0x558] sm:$0xff] }
 0x953   : > { %3082 = vmatprep.subr.bf16.mxu1 %v3081_v32  ;;  %v3117_v32 = vpack.c.bf16 %v2199_v22, %v2197_v21  ;;  %v3153_v18 = vpack.c.bf16 %v2235_v15, %v2233_v11  ;;  %v2232_v21 = vld [vmem:[#allocation6 + $0x540] sm:$0xff]  ;;  %v2234_v22 = vld [vmem:[#allocation6 + $0x550] sm:$0xff] }
 0x956   : > { %3084 = vmatpush1.bf16.msra.mxu1 %v3083_v19  ;;  %v2203_v19 = vld [vmem:[#allocation6 + $0x458] sm:$0xff] }
 0x957   : > { %3086 = vmatprep.subr.bf16.mxu1 %v3085_v16  ;;  %v2265_v16 = vsel %vm1380_vm3, %v2263_v27, %v2264_v29  ;;  %v3121_v9 = vpack.c.bf16 %v2203_v19, %v2201_v4  ;;  %v2237_v27 = vld [vmem:[#allocation6 + $0x568] sm:$0xff]  ;;  %v2239_v29 = vld [vmem:[#allocation6 + $0x578] sm:$0xff]  ;;  %v3159_v19 = vpack.c.bf16 %v2238_v14, %v2236_v35 }
 0x958   : > { %v2243_v4 = vld [vmem:[#allocation6 + $0x598] sm:$0xff] }
 0x95a   : > { %3088 = vmatpush1.bf16.msra.mxu1 %v3087_v41  ;;  %v2205_v41 = vld [vmem:[#allocation6 + $0x468] sm:$0xff] }
 0x95b   : > { %3090 = vmatprep.subr.bf16.mxu1 %v3089_v42  ;;  %v2207_v42 = vld [vmem:[#allocation6 + $0x478] sm:$0xff] }
 0x95c   : > { %v3125_v45 = vpack.c.bf16 %v2207_v42, %v2205_v41  ;;  %v3165_v42 = vpack.c.bf16 %v2247_v12, %v2245_v40 }
 0x95e   : > { %3092 = vmatpush1.bf16.msra.mxu1 %v3091_v25  ;;  %v2209_v25 = vld [vmem:[#allocation6 + $0x488] sm:$0xff] }
 0x95f   : > { %3094 = vmatprep.subr.bf16.mxu1 %v3093_v50  ;;  %v2211_v50 = vld [vmem:[#allocation6 + $0x498] sm:$0xff] }
 0x960   : > { %v3129_v26 = vpack.c.bf16 %v2211_v50, %v2209_v25  ;;  %v3169_v50 = vpack.c.bf16 %v2251_v49, %v2249_v47 }
 0x962   : > { %3096 = vmatpush1.bf16.msra.mxu1 %v3095_v53  ;;  %v2213_v53 = vld [vmem:[#allocation6 + $0x4a8] sm:$0xff] }
 0x963   : > { %3098 = vmatprep.subr.bf16.mxu1 %v3097_v54  ;;  %v2215_v54 = vld [vmem:[#allocation6 + $0x4b8] sm:$0xff] }
 0x964   : > { %v3133_v58 = vpack.c.bf16 %v2215_v54, %v2213_v53  ;;  %v3173_v54 = vpack.c.bf16 %v2255_v52, %v2253_v23 }
 0x966   : > { %3100 = vmatpush1.bf16.msra.mxu1 %v3099_v61  ;;  %v2217_v61 = vld [vmem:[#allocation6 + $0x4c8] sm:$0xff] }
 0x967   : > { %3102 = vmatprep.subr.bf16.mxu1 %v3101_v0  ;;  %v2219_v0 = vld [vmem:[#allocation6 + $0x4d8] sm:$0xff] }
 0x968   : > { %v3137_v2 = vpack.c.bf16 %v2219_v0, %v2217_v61  ;;  %v2260_v0 = vrot.slane %v2187_v59, 2 }
 0x96a   : > { %3104 = vmatpush1.bf16.msra.mxu1 %v3103_v6  ;;  %v2221_v6 = vld [vmem:[#allocation6 + $0x4e8] sm:$0xff] }
 0x96b   : > { %3106 = vmatprep.subr.bf16.mxu1 %v3105_v34  ;;  %v2223_v34 = vld [vmem:[#allocation6 + $0x4f8] sm:$0xff] }
 0x96c   : > { %v3141_v7 = vpack.c.bf16 %v2223_v34, %v2221_v6  ;;  %v2028_v6 = vrot.slane %v1872_v33, %v3875_v43 }
 0x96e   : > { %3108 = vmatpush1.bf16.msra.mxu1 %v3107_v20  ;;  %v2225_v20 = vld [vmem:[#allocation6 + $0x508] sm:$0xff] }
 0x96f   : > { %3110 = vmatprep.subr.bf16.mxu1 %v3109_v28  ;;  %v2227_v28 = vld [vmem:[#allocation6 + $0x518] sm:$0xff] }
 0x970   : > { %v3145_v37 = vpack.c.bf16 %v2227_v28, %v2225_v20  ;;  %v3277_v28 = vld [vmem:[%s3678_s14 + $0x8] sm:$0xff]  ;;  %s3411_s14 = smov [#allocation8]  }
 0x971   : > { %s3338_s23 = sshll.u32 %s3411_s14, 4  ;;  %s3339_s23 = int_to_ptr.vmem [resolvable:$false] %s3338_s23 }
 0x972   : > { %3112 = vmatpush1.bf16.msra.mxu1 %v3111_v56  ;;  %v3147_v56 = vpack.c.bf16 %v2226_v46, %v2224_v39  ;;  %s3340_s27 = scalar_lea.vmem %s3339_s23, 512  ;;  %p3341_p4 = scmp.lt.s32.totalorder %s3978_s18, %s3339_s23 }
 0x973   : > { %3114 = vmatprep.subr.bf16.mxu1 %v3113_v10  ;;  %v2230_v10 = vld [vmem:[#allocation6 + $0x530] sm:$0xff]  ;;  %p3342_p7 = scmp.lt.s32.totalorder %s3340_s27, %s3334_s20 }
 0x974   : > { %v3151_v17 = vpack.c.bf16 %v2230_v10, %v2228_v63 }
 0x975   : > { %2179 = vmatmul.mubr.f32.vlgmr.msra.gmra.mrb[8].mxu1 %v2108_v36  ;;  %v2241_v36 = vld [vmem:[#allocation6 + $0x588] sm:$0xff]  ;;  %p3343_p8 = por %p3342_p7, %p3341_p4 }
 0x976   : > { %3116 = vmatpush1.bf16.msra.mxu1 %v3115_v31  ;;  %2332 = vmatprep.mubr.f32.mxu1 %v2265_v16  ;;  %v3155_v31 = vpack.c.bf16 %v2234_v22, %v2232_v21  ;;  %v3161_v16 = vpack.c.bf16 %v2243_v4, %v2241_v36 }
 0x977   : > { %3118 = vmatprep.subr.bf16.mxu1 %v3117_v32  ;;  %v3157_v32 = vpack.c.bf16 %v2239_v29, %v2237_v27  ;;  %p3344_p11 = pnand %p3343_p8, %p3337_p3 }
 0x97a   : > { %3120 = vmatpush1.bf16.msra.mxu1 %v3119_v38  ;;  %v2240_v38 = vld [vmem:[#allocation6 + $0x580] sm:$0xff] }
 0x97b   : > { %3122 = vmatprep.subr.bf16.mxu1 %v3121_v9  ;;  %v2242_v9 = vld [vmem:[#allocation6 + $0x590] sm:$0xff] }
 0x97c   : > { %v3163_v41 = vpack.c.bf16 %v2242_v9, %v2240_v38 }
 0x97e   : > { %3124 = vmatpush1.bf16.msra.mxu1 %v3123_v44  ;;  %v2244_v44 = vld [vmem:[#allocation6 + $0x5a0] sm:$0xff] }
 0x97f   : > { %3126 = vmatprep.subr.bf16.mxu1 %v3125_v45  ;;  %v2246_v45 = vld [vmem:[#allocation6 + $0x5b0] sm:$0xff] }
 0x980   : > { %v3167_v25 = vpack.c.bf16 %v2246_v45, %v2244_v44 }
 0x982   : > { %3128 = vmatpush1.bf16.msra.mxu1 %v3127_v51  ;;  %v2248_v51 = vld [vmem:[#allocation6 + $0x5c0] sm:$0xff] }
 0x983   : > { %3130 = vmatprep.subr.bf16.mxu1 %v3129_v26  ;;  %v2250_v26 = vld [vmem:[#allocation6 + $0x5d0] sm:$0xff] }
 0x984   : > { %v3171_v53 = vpack.c.bf16 %v2250_v26, %v2248_v51 }
 0x986   : > { %3132 = vmatpush1.bf16.msra.mxu1 %v3131_v57  ;;  %v2252_v57 = vld [vmem:[#allocation6 + $0x5e0] sm:$0xff] }
 0x987   : > { %3134 = vmatprep.subr.bf16.mxu1 %v3133_v58  ;;  %v2254_v58 = vld [vmem:[#allocation6 + $0x5f0] sm:$0xff] }
 0x988   : > { %v3175_v61 = vpack.c.bf16 %v2254_v58, %v2252_v57 }
 0x98a   : > { %3136 = vmatpush1.bf16.msra.mxu1 %v3135_v1  ;;  %v2261_v1 = vrot.slane %v2189_v60, 2 }
 0x98b   : > { %3138 = vmatprep.subr.bf16.mxu1 %v3137_v2 }
 0x98c   : > { %v2262_v2 = vsel %vm1380_vm3, %v2260_v0, %v2261_v1 }
 0x98e   : > { %3140 = vmatpush1.bf16.msra.mxu1 %v3139_v3 }
 0x98f   : > { %3142 = vmatprep.subr.bf16.mxu1 %v3141_v7 }
 0x992   : > { %3144 = vmatpush1.bf16.msra.mxu1 %v3143_v30 }
 0x993   : > { %3146 = vmatprep.subr.bf16.mxu1 %v3145_v37 }
 0x996   : > { %3148 = vmatpush1.bf16.msra.mxu1 %v3147_v56 }
 0x997   : > { %3150 = vmatprep.subr.bf16.mxu1 %v3149_v62 }
 0x99a   : > { %3152 = vmatpush1.bf16.msra.mxu1 %v3151_v17 }
 0x99b   : > { %3154 = vmatprep.subr.bf16.mxu1 %v3153_v18 }
 0x99e   : > { %3156 = vmatpush1.bf16.msra.mxu1 %v3155_v31 }
 0x99f   : > { %3158 = vmatprep.subr.bf16.mxu1 %v3157_v32 }
 0x9a2   : > { %3160 = vmatpush1.bf16.msra.mxu1 %v3159_v19 }
 0x9a3   : > { %3162 = vmatprep.subr.bf16.mxu1 %v3161_v16 }
 0x9a6   : > { %3164 = vmatpush1.bf16.msra.mxu1 %v3163_v41 }
 0x9a7   : > { %3166 = vmatprep.subr.bf16.mxu1 %v3165_v42 }
 0x9aa   : > { %3168 = vmatpush1.bf16.msra.mxu1 %v3167_v25 }
 0x9ab   : > { %3170 = vmatprep.subr.bf16.mxu1 %v3169_v50 }
 0x9ae   : > { %3172 = vmatpush1.bf16.msra.mxu1 %v3171_v53 }
 0x9af   : > { %3174 = vmatprep.subr.bf16.mxu1 %v3173_v54 }
 0x9b2   : > { %3176 = vmatpush1.bf16.msra.mxu1 %v3175_v61 }
 0x9b5   : > { %2333 = vmatmul.mubr.f32.vlgmr.msra.gmra.mrb[8].mxu1 %v2262_v2 }
 0xa88   : > { %v2334_v34 = vpop.f32.mrb[8].mxu1 }
 0xa89   : > { %v3179_v3 = vadd.f32 %v2334_v34, %v2024_v5  ;;  %v2336_v7 = vpop.f32.mrb[9].mxu1 }
 0xa8a   : > { %v3180_v8 = vadd.f32 %v2336_v7, %v2028_v6 }
 0xa8b   : > { %v2341_v20 = vadd.f32 %v3276_v13, %v3179_v3 }
 0xa8c   : > { %v2342_v30 = vadd.f32 %v3277_v28, %v3180_v8 }
 0xa8d   : > { %2343 = vst [vmem:[%s543_s15] sm:$0xff] %v2341_v20 }
 0xa8e   : > { %2344 = vst [vmem:[%s543_s15 + $0x8] sm:$0xff] %v2342_v30 }
 0xa8f   : > { %3347 = shalt.err (!%p3344_p11)
}
 0xa90   : > { %s3348_s24 = scalar_lea.hbm %s3976_s22, 256  ;;  %s3352_s17 = scalar_lea.hbm %s4060_s28, 512 }
 0xa91   : > { %p3349_p13 = scmp.ne.s32.totalorder %s3976_s22, %s3348_s24  ;;  %p3353_p6 = scmp.lt.u32.totalorder %s3976_s22, %s4060_s28 }
 0xa92   : > { %p3354_p9 = scmp.lt.u32.totalorder %s3352_s17, %s3348_s24  ;;  %p3356_p12 = scmp.lt.u32.totalorder %s3348_s24, %s3976_s22 }
 0xa93   : > { %p3350_p5 = pnand %p3349_p13, %p4061_p1 }
 0xa94   : > { %p3355_p10 = por %p3354_p9, %p3353_p6 }
 0xa95   : > { %p3351_p0 = pneg %p3350_p5 }
 0xa96   : > { %p3357_p2 = por %p3356_p12, %p3355_p10 }
 0xa98   : > { %p3358_p3 = pnand %p3357_p2, %p3351_p0 }
 0xa9a   : > { %3361 = shalt.err (!%p3358_p3)
}
 0xa9b   : > { %3197 = dma.vmem_to_hbm [thread:$0]  (%p4061_p1), %s3978_s18, 256, %s3976_s22, %s2346_s13  }
 0xa9c PF: > { %s4062_s21 = sld [smem:[#allocation14_spill]]  ;;  %s4063_s16 = sld [smem:[#allocation12_spill]] }
 0xa9d   : > { %s4064_s20 = sld [smem:[#allocation17_spill]] }
 0xaa2   : > { %p3214_p4 = scmp.ge.s32.totalorder %s4062_s21, 2  ;;  %s2372_s14 = sand.u32 1, %s4063_s16  }
 0xaa3   : > { %p4065_p7 = scmp.ne.s32.totalorder %s4064_s20, 0  ;;  %s2373_s23 = scalar_lea.sflag [#allocation5], %s2372_s14 }
 0xaa5   : > { %p3207_p8 = pnand %p3214_p4, %p4065_p7 }
 0xaa7   : > { %3387 = dma.done.wait (!%p3207_p8), %s2373_s23, 256  }
 0xaa8   : > { %3389 = vsyncadd (!%p3207_p8), %s2373_s23, 4294967040  ;;  %s4066_s21 = sld [smem:[#allocation15_spill]]  ;;  %s4067_s27 = sld [smem:[#allocation13_spill]] }
 0xaa9   : > { %s4068_s20 = sld [smem:[#allocation16_spill]]  ;;  %s4069_s18 = smov %s3396_s19 }
 0xaae   : > { %p27_p11 = scmp.ge.s32.totalorder %s4066_s21, 4   ;;  %s4070_s19 = smov %s4067_s27 }
 0xab0   :  { %29 = sbr.rel (!%p27_p11) target bundleno = 7 (0x7), region = 135 }
 0xab7   :  { %2378 = vsyncpa [#allocation4], 1 }
 0xab8   :  { %2380 = vsyncpa [#allocation4 + $0x1], 1 }
 0xab9   :  { %2381 = vsyncpa [#allocation7], 1 }
 0xaba   :  { %2382 = vsyncpa [#allocation5], 1 }
 0xabb   :  { %2384 = vsyncpa [#allocation5 + $0x1], 1 }

</bundles_post_ra>
